<compile_context>
chip_gen: v6e
topology: v6e:2x2x1
jax: 0.10.0
libtpu: 0.0.40
codegen_flags: <defaults>
</compile_context>

<pallas_src>
import functools

import jax
import jax.numpy as jnp
from jax.experimental import pallas as pl
from jax.experimental.pallas import tpu as pltpu

IN_DIM = 784
HID_DIM = 64


def _autoencoder_kernel(x_ref, w1_ref, b1_ref, w2_ref, b2_ref, o_ref):
    # Encoder: Linear(784 -> 64) + ReLU.  Operands arrive in the compute dtype
    # (bf16 by default); accumulation is f32 on the MXU.
    h = jnp.dot(x_ref[...], w1_ref[...], preferred_element_type=jnp.float32)
    h = jnp.maximum(h + b1_ref[...], 0.0)          # b1 is (1, 64) f32, broadcasts
    # Decoder: Linear(64 -> 784) + Sigmoid.  Cast h back to the compute dtype so
    # this GEMM is also a single bf16 MXU pass (not multi-pass f32 emulation).
    y = jnp.dot(h.astype(w2_ref.dtype), w2_ref[...],
                preferred_element_type=jnp.float32)
    y = y + b2_ref[...]                            # b2 is (1, 784) f32
    # sigmoid(y) == 0.5 * (tanh(0.5*y) + 1): one EUP transcendental per element.
    o_ref[...] = (0.5 * (jnp.tanh(0.5 * y) + 1.0)).astype(o_ref.dtype)


@functools.partial(
    jax.jit,
    static_argnames=("batch_tile", "compute_dtype", "out_dtype",
                     "single_buffer_params"))
def autoencoder_forward(x, w1, b1, w2, b2, *, batch_tile=1024,
                        compute_dtype=jnp.bfloat16, out_dtype=None,
                        single_buffer_params=True):
    B = x.shape[0]
    cdt = jnp.dtype(compute_dtype)
    odt = jnp.dtype(out_dtype) if out_dtype is not None else cdt

    # ---- tile selection -----------------------------------------------------
    if B <= batch_tile:
        # Split a single-tile batch into (at least) two grid steps so the
        # "parallel" batch axis shards across both v7x TensorCores.
        half = (B + 1) // 2
        bt = max(8, ((half + 7) // 8) * 8)
    else:
        bt = max(8, (batch_tile // 8) * 8)
    Bp = ((B + bt - 1) // bt) * bt                 # batch padded to a tile multiple

    # ---- cast + pad inputs (bf16 streaming; biases stay f32) ----------------
    xp = x.astype(cdt)
    if Bp != B:
        xp = jnp.pad(xp, ((0, Bp - B), (0, 0)))
    w1c = w1.astype(cdt)
    w2c = w2.astype(cdt)
    b1c = b1.astype(jnp.float32)
    b2c = b2.astype(jnp.float32)

    # Resident parameters: constant index_map -> single DMA, single buffer.
    pkw = dict(pipeline_mode=pl.Buffered(1)) if single_buffer_params else {}

    n_param_bytes = (IN_DIM * HID_DIM * 2) * cdt.itemsize + (HID_DIM + IN_DIM) * 4
    cost = pl.CostEstimate(
        flops=2 * 2 * Bp * IN_DIM * HID_DIM,                       # two GEMMs
        transcendentals=Bp * IN_DIM,                               # one tanh / elem
        bytes_accessed=Bp * IN_DIM * (cdt.itemsize + odt.itemsize) + n_param_bytes,
    )

    out = pl.pallas_call(
        _autoencoder_kernel,
        out_shape=jax.ShapeDtypeStruct((Bp, IN_DIM), odt),
        grid_spec=pltpu.PrefetchScalarGridSpec(
            num_scalar_prefetch=0,
            grid=(Bp // bt,),
            in_specs=[
                # activations: tile over the batch axis (double-buffered stream)
                pl.BlockSpec((bt, IN_DIM), lambda i: (i, 0)),
                # parameters: full-array blocks, resident across the grid
                pl.BlockSpec((IN_DIM, HID_DIM), lambda i: (0, 0), **pkw),
                pl.BlockSpec((1, HID_DIM), lambda i: (0, 0), **pkw),
                pl.BlockSpec((HID_DIM, IN_DIM), lambda i: (0, 0), **pkw),
                pl.BlockSpec((1, IN_DIM), lambda i: (0, 0), **pkw),
            ],
            out_specs=pl.BlockSpec((bt, IN_DIM), lambda i: (i, 0)),
        ),
        compiler_params=pltpu.CompilerParams(
            dimension_semantics=("parallel",),
        ),
        cost_estimate=cost,
    )(xp, w1c, b1c, w2c, b2c)

    return out[:B] if Bp != B else out


def init_params(key):
    """Deterministic init matching torch.nn.Linear default U(-1/sqrt(fan_in), +)."""
    k1, k2, k3, k4 = jax.random.split(key, 4)
    bound1 = 1.0 / (IN_DIM ** 0.5)
    bound2 = 1.0 / (HID_DIM ** 0.5)
    # stored as (in, out) so the kernel computes x @ W + b
    w1 = jax.random.uniform(k1, (IN_DIM, HID_DIM), jnp.float32, -bound1, bound1)
    b1 = jax.random.uniform(k2, (1, HID_DIM), jnp.float32, -bound1, bound1)
    w2 = jax.random.uniform(k3, (HID_DIM, IN_DIM), jnp.float32, -bound2, bound2)
    b2 = jax.random.uniform(k4, (1, IN_DIM), jnp.float32, -bound2, bound2)
    return w1, b1, w2, b2


def reference_forward(x, w1, b1, w2, b2):
    h = jnp.maximum(x @ w1 + b1, 0.0)
    return jax.nn.sigmoid(h @ w2 + b2)


if __name__ == "__main__":
    key = jax.random.PRNGKey(0)
    kx, kp = jax.random.split(key)
    w1, b1, w2, b2 = init_params(kp)

    def run(x, **kw):
        try:
            return jax.block_until_ready(
                autoencoder_forward(x, w1, b1, w2, b2, **kw))
        except Exception:
            # Fallback if pipeline_mode=pl.Buffered(1) is unsupported here.
            return jax.block_until_ready(
                autoencoder_forward(x, w1, b1, w2, b2,
                                    single_buffer_params=False, **kw))

    # 1) Exact-parity check vs the f32 reference (compute_dtype=f32 path).
    x_small = jax.random.normal(kx, (8, IN_DIM), dtype=jnp.float32)
    out_f32 = run(x_small, compute_dtype=jnp.float32, out_dtype=jnp.float32)
    ref_small = reference_forward(x_small, w1, b1, w2, b2)
    assert out_f32.shape == (8, IN_DIM)
    assert jnp.allclose(out_f32, ref_small, atol=1e-5, rtol=1e-5), "mismatch (f32)"

    # 2) Default fast path: bf16 streaming + bf16 MXU operands, f32 accumulate.
    #    Multi-block case exercising the batch-tiled pipeline (grid >= 2).
    x_tiled = jax.random.normal(kx, (64, IN_DIM), dtype=jnp.float32)
    out_bf16 = run(x_tiled, batch_tile=16)
    ref_tiled = reference_forward(x_tiled, w1, b1, w2, b2)
    assert out_bf16.shape == (64, IN_DIM)
    assert jnp.allclose(out_bf16.astype(jnp.float32), ref_tiled,
                        atol=2e-2, rtol=2e-2), "mismatch (bf16)"

    print("KERNEL_OK")
</pallas_src>

<mosaic_0001>
module attributes {stable_mosaic.version = 11 : i64} {
  func.func @_autoencoder_kernel(%arg0: i32, %arg1: memref<8x784xf32, #tpu.memory_space<vmem>>, %arg2: memref<784x64xf32, #tpu.memory_space<vmem>>, %arg3: memref<1x64xf32, #tpu.memory_space<vmem>>, %arg4: memref<64x784xf32, #tpu.memory_space<vmem>>, %arg5: memref<1x784xf32, #tpu.memory_space<vmem>>, %arg6: memref<8x784xf32, #tpu.memory_space<vmem>>) attributes {dimension_semantics = [#tpu.dimension_semantics<parallel>], iteration_bounds = array<i64: 1>, scalar_prefetch = 0 : i64, scratch_operands = 0 : i64, tpu.core_type = #tpu.core_type<tc>, window_params = [{transform_indices = @transform_0, window_bounds = array<i64: 8, 784>}, {pipeline_mode = #tpu.pipeline_mode<synchronous>, transform_indices = @transform_1, window_bounds = array<i64: 784, 64>}, {pipeline_mode = #tpu.pipeline_mode<synchronous>, transform_indices = @transform_2, window_bounds = array<i64: 1, 64>}, {pipeline_mode = #tpu.pipeline_mode<synchronous>, transform_indices = @transform_3, window_bounds = array<i64: 64, 784>}, {pipeline_mode = #tpu.pipeline_mode<synchronous>, transform_indices = @transform_4, window_bounds = array<i64: 1, 784>}, {transform_indices = @transform_5, window_bounds = array<i64: 8, 784>}]} {
    %c0 = arith.constant 0 : index
    %c0_0 = arith.constant 0 : index
    %0 = vector.load %arg1[%c0, %c0_0] : memref<8x784xf32, #tpu.memory_space<vmem>>, vector<8x784xf32>
    %c0_1 = arith.constant 0 : index
    %c0_2 = arith.constant 0 : index
    %1 = vector.load %arg2[%c0_1, %c0_2] : memref<784x64xf32, #tpu.memory_space<vmem>>, vector<784x64xf32>
    %cst = arith.constant dense<0.000000e+00> : vector<8x64xf32>
    %2 = tpu.matmul %0, %1, %cst {dimension_numbers = #tpu.dot_dimension_numbers<[1], [0], [0], [1], [0, 0, 1, 1], [], []>} : vector<8x784xf32>, vector<784x64xf32>, vector<8x64xf32> -> vector<8x64xf32>
    %c0_3 = arith.constant 0 : index
    %c0_4 = arith.constant 0 : index
    %3 = vector.load %arg3[%c0_3, %c0_4] : memref<1x64xf32, #tpu.memory_space<vmem>>, vector<1x64xf32>
    %4 = vector.broadcast %3 : vector<1x64xf32> to vector<8x64xf32>
    %5 = arith.addf %2, %4 : vector<8x64xf32>
    %cst_5 = arith.constant 0.000000e+00 : f32
    %6 = vector.broadcast %cst_5 : f32 to vector<8x64xf32>
    %7 = arith.maximumf %5, %6 : vector<8x64xf32>
    %c0_6 = arith.constant 0 : index
    %c0_7 = arith.constant 0 : index
    %8 = vector.load %arg4[%c0_6, %c0_7] : memref<64x784xf32, #tpu.memory_space<vmem>>, vector<64x784xf32>
    %cst_8 = arith.constant dense<0.000000e+00> : vector<8x784xf32>
    %9 = tpu.matmul %7, %8, %cst_8 {dimension_numbers = #tpu.dot_dimension_numbers<[1], [0], [0], [1], [0, 0, 1, 1], [], []>} : vector<8x64xf32>, vector<64x784xf32>, vector<8x784xf32> -> vector<8x784xf32>
    %c0_9 = arith.constant 0 : index
    %c0_10 = arith.constant 0 : index
    %10 = vector.load %arg5[%c0_9, %c0_10] : memref<1x784xf32, #tpu.memory_space<vmem>>, vector<1x784xf32>
    %11 = vector.broadcast %10 : vector<1x784xf32> to vector<8x784xf32>
    %12 = arith.addf %9, %11 : vector<8x784xf32>
    %cst_11 = arith.constant 5.000000e-01 : f32
    %13 = vector.broadcast %cst_11 : f32 to vector<8x784xf32>
    %14 = arith.mulf %13, %12 : vector<8x784xf32>
    %15 = math.tanh %14 : vector<8x784xf32>
    %cst_12 = arith.constant 1.000000e+00 : f32
    %16 = vector.broadcast %cst_12 : f32 to vector<8x784xf32>
    %17 = arith.addf %15, %16 : vector<8x784xf32>
    %cst_13 = arith.constant 5.000000e-01 : f32
    %18 = vector.broadcast %cst_13 : f32 to vector<8x784xf32>
    %19 = arith.mulf %18, %17 : vector<8x784xf32>
    %c0_14 = arith.constant 0 : index
    %c0_15 = arith.constant 0 : index
    %20 = vector.load %arg6[%c0_14, %c0_15] : memref<8x784xf32, #tpu.memory_space<vmem>>, vector<8x784xf32>
    tpu.vector_store %arg6[%c0_14, %c0_15], %19 {strides = array<i32>} : memref<8x784xf32, #tpu.memory_space<vmem>>, vector<8x784xf32>,
    return
  }
  func.func @transform_0(%arg0: i32) -> (i32, i32) {
    %c0_i32 = arith.constant 0 : i32
    %c0_i32_0 = arith.constant 0 : i32
    return %arg0, %c0_i32 : i32, i32
  }
  func.func @transform_1(%arg0: i32) -> (i32, i32) {
    %c0_i32 = arith.constant 0 : i32
    %c0_i32_0 = arith.constant 0 : i32
    %c0_i32_1 = arith.constant 0 : i32
    return %c0_i32, %c0_i32_0 : i32, i32
  }
  func.func @transform_2(%arg0: i32) -> (i32, i32) {
    %c0_i32 = arith.constant 0 : i32
    %c0_i32_0 = arith.constant 0 : i32
    %c0_i32_1 = arith.constant 0 : i32
    return %c0_i32, %c0_i32_0 : i32, i32
  }
  func.func @transform_3(%arg0: i32) -> (i32, i32) {
    %c0_i32 = arith.constant 0 : i32
    %c0_i32_0 = arith.constant 0 : i32
    %c0_i32_1 = arith.constant 0 : i32
    return %c0_i32, %c0_i32_0 : i32, i32
  }
  func.func @transform_4(%arg0: i32) -> (i32, i32) {
    %c0_i32 = arith.constant 0 : i32
    %c0_i32_0 = arith.constant 0 : i32
    %c0_i32_1 = arith.constant 0 : i32
    return %c0_i32, %c0_i32_0 : i32, i32
  }
  func.func @transform_5(%arg0: i32) -> (i32, i32) {
    %c0_i32 = arith.constant 0 : i32
    %c0_i32_0 = arith.constant 0 : i32
    return %arg0, %c0_i32 : i32, i32
  }
}

module attributes {stable_mosaic.version = 11 : i64} {
  func.func @_autoencoder_kernel(%arg0: i32, %arg1: memref<8x784xf32, #tpu.memory_space<vmem>>, %arg2: memref<784x64xf32, #tpu.memory_space<vmem>>, %arg3: memref<1x64xf32, #tpu.memory_space<vmem>>, %arg4: memref<64x784xf32, #tpu.memory_space<vmem>>, %arg5: memref<1x784xf32, #tpu.memory_space<vmem>>, %arg6: memref<8x784xf32, #tpu.memory_space<vmem>>) attributes {dimension_semantics = [#tpu.dimension_semantics<parallel>], iteration_bounds = array<i64: 1>, scalar_prefetch = 0 : i64, scratch_operands = 0 : i64, tpu.core_type = #tpu.core_type<tc>, window_params = [{transform_indices = @transform_0, window_bounds = array<i64: 8, 784>}, {pipeline_mode = #tpu.pipeline_mode<synchronous>, transform_indices = @transform_1, window_bounds = array<i64: 784, 64>}, {pipeline_mode = #tpu.pipeline_mode<synchronous>, transform_indices = @transform_2, window_bounds = array<i64: 1, 64>}, {pipeline_mode = #tpu.pipeline_mode<synchronous>, transform_indices = @transform_3, window_bounds = array<i64: 64, 784>}, {pipeline_mode = #tpu.pipeline_mode<synchronous>, transform_indices = @transform_4, window_bounds = array<i64: 1, 784>}, {transform_indices = @transform_5, window_bounds = array<i64: 8, 784>}]} {
    %c0 = arith.constant 0 : index
    %c0_0 = arith.constant 0 : index
    %0 = vector.load %arg1[%c0, %c0_0] : memref<8x784xf32, #tpu.memory_space<vmem>>, vector<8x784xf32>
    %c0_1 = arith.constant 0 : index
    %c0_2 = arith.constant 0 : index
    %1 = vector.load %arg2[%c0_1, %c0_2] : memref<784x64xf32, #tpu.memory_space<vmem>>, vector<784x64xf32>
    %cst = arith.constant dense<0.000000e+00> : vector<8x64xf32>
    %2 = tpu.matmul %0, %1, %cst {dimension_numbers = #tpu.dot_dimension_numbers<[1], [0], [0], [1], [0, 0, 1, 1], [], []>} : vector<8x784xf32>, vector<784x64xf32>, vector<8x64xf32> -> vector<8x64xf32>
    %c0_3 = arith.constant 0 : index
    %c0_4 = arith.constant 0 : index
    %3 = vector.load %arg3[%c0_3, %c0_4] : memref<1x64xf32, #tpu.memory_space<vmem>>, vector<1x64xf32>
    %4 = vector.broadcast %3 : vector<1x64xf32> to vector<8x64xf32>
    %5 = arith.addf %2, %4 : vector<8x64xf32>
    %cst_5 = arith.constant 0.000000e+00 : f32
    %6 = vector.broadcast %cst_5 : f32 to vector<8x64xf32>
    %7 = arith.maximumf %5, %6 : vector<8x64xf32>
    %c0_6 = arith.constant 0 : index
    %c0_7 = arith.constant 0 : index
    %8 = vector.load %arg4[%c0_6, %c0_7] : memref<64x784xf32, #tpu.memory_space<vmem>>, vector<64x784xf32>
    %cst_8 = arith.constant dense<0.000000e+00> : vector<8x784xf32>
    %9 = tpu.matmul %7, %8, %cst_8 {dimension_numbers = #tpu.dot_dimension_numbers<[1], [0], [0], [1], [0, 0, 1, 1], [], []>} : vector<8x64xf32>, vector<64x784xf32>, vector<8x784xf32> -> vector<8x784xf32>
    %c0_9 = arith.constant 0 : index
    %c0_10 = arith.constant 0 : index
    %10 = vector.load %arg5[%c0_9, %c0_10] : memref<1x784xf32, #tpu.memory_space<vmem>>, vector<1x784xf32>
    %11 = vector.broadcast %10 : vector<1x784xf32> to vector<8x784xf32>
    %12 = arith.addf %9, %11 : vector<8x784xf32>
    %cst_11 = arith.constant 5.000000e-01 : f32
    %13 = vector.broadcast %cst_11 : f32 to vector<8x784xf32>
    %14 = arith.mulf %13, %12 : vector<8x784xf32>
    %15 = math.tanh %14 : vector<8x784xf32>
    %cst_12 = arith.constant 1.000000e+00 : f32
    %16 = vector.broadcast %cst_12 : f32 to vector<8x784xf32>
    %17 = arith.addf %15, %16 : vector<8x784xf32>
    %cst_13 = arith.constant 5.000000e-01 : f32
    %18 = vector.broadcast %cst_13 : f32 to vector<8x784xf32>
    %19 = arith.mulf %18, %17 : vector<8x784xf32>
    %c0_14 = arith.constant 0 : index
    %c0_15 = arith.constant 0 : index
    %20 = vector.load %arg6[%c0_14, %c0_15] : memref<8x784xf32, #tpu.memory_space<vmem>>, vector<8x784xf32>
    tpu.vector_store %arg6[%c0_14, %c0_15], %19 {strides = array<i32>} : memref<8x784xf32, #tpu.memory_space<vmem>>, vector<8x784xf32>,
    return
  }
  func.func @transform_0(%arg0: i32) -> (i32, i32) {
    %c0_i32 = arith.constant 0 : i32
    %c0_i32_0 = arith.constant 0 : i32
    return %arg0, %c0_i32 : i32, i32
  }
  func.func @transform_1(%arg0: i32) -> (i32, i32) {
    %c0_i32 = arith.constant 0 : i32
    %c0_i32_0 = arith.constant 0 : i32
    %c0_i32_1 = arith.constant 0 : i32
    return %c0_i32, %c0_i32_0 : i32, i32
  }
  func.func @transform_2(%arg0: i32) -> (i32, i32) {
    %c0_i32 = arith.constant 0 : i32
    %c0_i32_0 = arith.constant 0 : i32
    %c0_i32_1 = arith.constant 0 : i32
    return %c0_i32, %c0_i32_0 : i32, i32
  }
  func.func @transform_3(%arg0: i32) -> (i32, i32) {
    %c0_i32 = arith.constant 0 : i32
    %c0_i32_0 = arith.constant 0 : i32
    %c0_i32_1 = arith.constant 0 : i32
    return %c0_i32, %c0_i32_0 : i32, i32
  }
  func.func @transform_4(%arg0: i32) -> (i32, i32) {
    %c0_i32 = arith.constant 0 : i32
    %c0_i32_0 = arith.constant 0 : i32
    %c0_i32_1 = arith.constant 0 : i32
    return %c0_i32, %c0_i32_0 : i32, i32
  }
  func.func @transform_5(%arg0: i32) -> (i32, i32) {
    %c0_i32 = arith.constant 0 : i32
    %c0_i32_0 = arith.constant 0 : i32
    return %arg0, %c0_i32 : i32, i32
  }
}

</mosaic_0001>

<bundles_post_ra>
// kernel: autoencoder_forward.1
= control target key start
LH: loop header
LB: loop body
LE: loop exit
PB: predicated region body
PF: predicated region fallthrough
CT: control target
= control target key end

     0   :  { %s1583_s0 = inlined_call_operand.vmem [shape: f32[8,784], index: 0, kind: input, shape index: {}]   ;;  %s1584_s1 = inlined_call_operand.vmem [shape: f32[784,64], index: 1, kind: input, shape index: {}]   ;;  %s1585_s2 = inlined_call_operand.vmem [shape: f32[1,64], index: 2, kind: input, shape index: {}]   ;;  %s1586_s3 = inlined_call_operand.vmem [shape: f32[64,784], index: 3, kind: input, shape index: {}]   ;;  %s1587_s4 = inlined_call_operand.vmem [shape: f32[1,784], index: 4, kind: input, shape index: {}]   ;;  %s1588_s5 = inlined_call_operand.hbm [shape: f32[8,784], index: 5, kind: output, shape index: {}]  }
   0x1   :  { %v59_v0 = vld [vmem:[%s1584_s1 + $0xf8] sm:$0xff]  ;;  %v58_v2 = vld [vmem:[%s1584_s1 + $0xf0] sm:$0xff]  ;;  %v57_v6 = vld [vmem:[%s1584_s1 + $0xe8] sm:$0xff] }
   0x2   :  { %v43_v1 = vld [vmem:[%s1584_s1 + $0x78] sm:$0xff]  ;;  %853 = vmatprep.subr.mxu0 %v59_v0  ;;  %v42_v4 = vld [vmem:[%s1584_s1 + $0x70] sm:$0xff]  ;;  %v41_v8 = vld [vmem:[%s1584_s1 + $0x68] sm:$0xff] }
   0x3   :  { %v91_v3 = vld [vmem:[%s1584_s1 + $0x1f8] sm:$0xff]  ;;  %854 = vmatpush3.msra.mxu0 %v43_v1  ;;  %v90_v7 = vld [vmem:[%s1584_s1 + $0x1f0] sm:$0xff]  ;;  %v89_v10 = vld [vmem:[%s1584_s1 + $0x1e8] sm:$0xff] }
   0x4   :  { %v75_v5 = vld [vmem:[%s1584_s1 + $0x178] sm:$0xff]  ;;  %888 = vmatprep.subr.mxu1 %v91_v3  ;;  %855 = vmatprep.subr.mxu0 %v58_v2  ;;  %v74_v9 = vld [vmem:[%s1584_s1 + $0x170] sm:$0xff]  ;;  %v56_v11 = vld [vmem:[%s1584_s1 + $0xe0] sm:$0xff] }
   0x5   :  { %889 = vmatpush3.msra.mxu1 %v75_v5  ;;  %856 = vmatpush3.msra.mxu0 %v42_v4  ;;  %v73_v12 = vld [vmem:[%s1584_s1 + $0x168] sm:$0xff]  ;;  %v40_v13 = vld [vmem:[%s1584_s1 + $0x60] sm:$0xff]  ;;  %v55_v15 = vld [vmem:[%s1584_s1 + $0xd8] sm:$0xff] }
   0x6   :  { %890 = vmatprep.subr.mxu1 %v90_v7  ;;  %857 = vmatprep.subr.mxu0 %v57_v6  ;;  %v88_v14 = vld [vmem:[%s1584_s1 + $0x1e0] sm:$0xff]  ;;  %v39_v17 = vld [vmem:[%s1584_s1 + $0x58] sm:$0xff]  ;;  %v54_v19 = vld [vmem:[%s1584_s1 + $0xd0] sm:$0xff] }
   0x7   :  { %891 = vmatpush3.msra.mxu1 %v74_v9  ;;  %858 = vmatpush3.msra.mxu0 %v41_v8  ;;  %v72_v16 = vld [vmem:[%s1584_s1 + $0x160] sm:$0xff]  ;;  %v87_v18 = vld [vmem:[%s1584_s1 + $0x1d8] sm:$0xff]  ;;  %v38_v21 = vld [vmem:[%s1584_s1 + $0x50] sm:$0xff] }
   0x8   :  { %892 = vmatprep.subr.mxu1 %v89_v10  ;;  %859 = vmatprep.subr.mxu0 %v56_v11  ;;  %v71_v20 = vld [vmem:[%s1584_s1 + $0x158] sm:$0xff]  ;;  %v86_v22 = vld [vmem:[%s1584_s1 + $0x1d0] sm:$0xff]  ;;  %v53_v23 = vld [vmem:[%s1584_s1 + $0xc8] sm:$0xff] }
   0x9   :  { %893 = vmatpush3.msra.mxu1 %v73_v12  ;;  %860 = vmatpush3.msra.mxu0 %v40_v13  ;;  %v70_v24 = vld [vmem:[%s1584_s1 + $0x150] sm:$0xff]  ;;  %v37_v25 = vld [vmem:[%s1584_s1 + $0x48] sm:$0xff]  ;;  %v52_v27 = vld [vmem:[%s1584_s1 + $0xc0] sm:$0xff] }
   0xa   :  { %894 = vmatprep.subr.mxu1 %v88_v14  ;;  %861 = vmatprep.subr.mxu0 %v55_v15  ;;  %v85_v26 = vld [vmem:[%s1584_s1 + $0x1c8] sm:$0xff]  ;;  %v36_v29 = vld [vmem:[%s1584_s1 + $0x40] sm:$0xff]  ;;  %v51_v31 = vld [vmem:[%s1584_s1 + $0xb8] sm:$0xff] }
   0xb   :  { %895 = vmatpush3.msra.mxu1 %v72_v16  ;;  %862 = vmatpush3.msra.mxu0 %v39_v17  ;;  %v69_v28 = vld [vmem:[%s1584_s1 + $0x148] sm:$0xff]  ;;  %v84_v30 = vld [vmem:[%s1584_s1 + $0x1c0] sm:$0xff]  ;;  %v35_v33 = vld [vmem:[%s1584_s1 + $0x38] sm:$0xff] }
   0xc   :  { %896 = vmatprep.subr.mxu1 %v87_v18  ;;  %863 = vmatprep.subr.mxu0 %v54_v19  ;;  %v68_v32 = vld [vmem:[%s1584_s1 + $0x140] sm:$0xff]  ;;  %v83_v34 = vld [vmem:[%s1584_s1 + $0x1b8] sm:$0xff]  ;;  %v50_v35 = vld [vmem:[%s1584_s1 + $0xb0] sm:$0xff] }
   0xd   :  { %897 = vmatpush3.msra.mxu1 %v71_v20  ;;  %864 = vmatpush3.msra.mxu0 %v38_v21  ;;  %v67_v36 = vld [vmem:[%s1584_s1 + $0x138] sm:$0xff]  ;;  %v34_v37 = vld [vmem:[%s1584_s1 + $0x30] sm:$0xff]  ;;  %v49_v39 = vld [vmem:[%s1584_s1 + $0xa8] sm:$0xff] }
   0xe   :  { %898 = vmatprep.subr.mxu1 %v86_v22  ;;  %865 = vmatprep.subr.mxu0 %v53_v23  ;;  %v82_v38 = vld [vmem:[%s1584_s1 + $0x1b0] sm:$0xff]  ;;  %v33_v41 = vld [vmem:[%s1584_s1 + $0x28] sm:$0xff]  ;;  %v48_v43 = vld [vmem:[%s1584_s1 + $0xa0] sm:$0xff] }
   0xf   :  { %899 = vmatpush3.msra.mxu1 %v70_v24  ;;  %866 = vmatpush3.msra.mxu0 %v37_v25  ;;  %v66_v40 = vld [vmem:[%s1584_s1 + $0x130] sm:$0xff]  ;;  %v81_v42 = vld [vmem:[%s1584_s1 + $0x1a8] sm:$0xff]  ;;  %v32_v45 = vld [vmem:[%s1584_s1 + $0x20] sm:$0xff] }
  0x10   :  { %900 = vmatprep.subr.mxu1 %v85_v26  ;;  %867 = vmatprep.subr.mxu0 %v52_v27  ;;  %v65_v44 = vld [vmem:[%s1584_s1 + $0x128] sm:$0xff]  ;;  %v80_v46 = vld [vmem:[%s1584_s1 + $0x1a0] sm:$0xff]  ;;  %v47_v47 = vld [vmem:[%s1584_s1 + $0x98] sm:$0xff] }
  0x11   :  { %901 = vmatpush3.msra.mxu1 %v69_v28  ;;  %868 = vmatpush3.msra.mxu0 %v36_v29  ;;  %v64_v48 = vld [vmem:[%s1584_s1 + $0x120] sm:$0xff]  ;;  %v31_v49 = vld [vmem:[%s1584_s1 + $0x18] sm:$0xff]  ;;  %v46_v51 = vld [vmem:[%s1584_s1 + $0x90] sm:$0xff] }
  0x12   :  { %902 = vmatprep.subr.mxu1 %v84_v30  ;;  %869 = vmatprep.subr.mxu0 %v51_v31  ;;  %v79_v50 = vld [vmem:[%s1584_s1 + $0x198] sm:$0xff]  ;;  %v30_v53 = vld [vmem:[%s1584_s1 + $0x10] sm:$0xff]  ;;  %v45_v55 = vld [vmem:[%s1584_s1 + $0x88] sm:$0xff] }
  0x13   :  { %903 = vmatpush3.msra.mxu1 %v68_v32  ;;  %870 = vmatpush3.msra.mxu0 %v35_v33  ;;  %v63_v52 = vld [vmem:[%s1584_s1 + $0x118] sm:$0xff]  ;;  %v78_v54 = vld [vmem:[%s1584_s1 + $0x190] sm:$0xff]  ;;  %v29_v57 = vld [vmem:[%s1584_s1 + $0x8] sm:$0xff] }
  0x14   :  { %904 = vmatprep.subr.mxu1 %v83_v34  ;;  %871 = vmatprep.subr.mxu0 %v50_v35  ;;  %v62_v56 = vld [vmem:[%s1584_s1 + $0x110] sm:$0xff]  ;;  %v77_v58 = vld [vmem:[%s1584_s1 + $0x188] sm:$0xff]  ;;  %v44_v59 = vld [vmem:[%s1584_s1 + $0x80] sm:$0xff] }
  0x15   :  { %905 = vmatpush3.msra.mxu1 %v67_v36  ;;  %872 = vmatpush3.msra.mxu0 %v34_v37  ;;  %v22_v60 = vld [vmem:[%s1583_s0 + $0x8] sm:$0xff]  ;;  %v28_v61 = vld [vmem:[%s1584_s1] sm:$0xff]  ;;  %v123_v1 = vld [vmem:[%s1584_s1 + $0x2f8] sm:$0xff] }
  0x16   :  { %906 = vmatprep.subr.mxu1 %v82_v38  ;;  %873 = vmatprep.subr.mxu0 %v49_v39  ;;  %v61_v62 = vld [vmem:[%s1584_s1 + $0x108] sm:$0xff]  ;;  %v21_v63 = vld [vmem:[%s1583_s0] sm:$0xff]  ;;  %v24_v3 = vld [vmem:[%s1583_s0 + $0x18] sm:$0xff] }
  0x17   :  { %907 = vmatpush3.msra.mxu1 %v66_v40  ;;  %874 = vmatpush3.msra.mxu0 %v33_v41  ;;  %v76_v0 = vld [vmem:[%s1584_s1 + $0x180] sm:$0xff]  ;;  %v107_v4 = vld [vmem:[%s1584_s1 + $0x278] sm:$0xff]  ;;  %v23_v5 = vld [vmem:[%s1583_s0 + $0x10] sm:$0xff] }
  0x18   :  { %908 = vmatprep.subr.mxu1 %v81_v42  ;;  %875 = vmatprep.subr.mxu0 %v48_v43  ;;  %v60_v2 = vld [vmem:[%s1584_s1 + $0x100] sm:$0xff]  ;;  %v122_v6 = vld [vmem:[%s1584_s1 + $0x2f0] sm:$0xff]  ;;  %v26_v8 = vld [vmem:[%s1583_s0 + $0x28] sm:$0xff] }
  0x19   :  { %909 = vmatpush3.msra.mxu1 %v65_v44  ;;  %876 = vmatpush3.msra.mxu0 %v32_v45  ;;  %v106_v7 = vld [vmem:[%s1584_s1 + $0x270] sm:$0xff]  ;;  %v121_v9 = vld [vmem:[%s1584_s1 + $0x2e8] sm:$0xff] }
  0x1a   :  { %910 = vmatprep.subr.mxu1 %v80_v46  ;;  %877 = vmatprep.subr.mxu0 %v47_v47 }
  0x1b   :  { %911 = vmatpush3.msra.mxu1 %v64_v48  ;;  %878 = vmatpush3.msra.mxu0 %v31_v49 }
  0x1c   :  { %912 = vmatprep.subr.mxu1 %v79_v50  ;;  %879 = vmatprep.subr.mxu0 %v46_v51 }
  0x1d   :  { %913 = vmatpush3.msra.mxu1 %v63_v52  ;;  %880 = vmatpush3.msra.mxu0 %v30_v53 }
  0x1e   :  { %914 = vmatprep.subr.mxu1 %v78_v54  ;;  %881 = vmatprep.subr.mxu0 %v45_v55 }
  0x1f   :  { %915 = vmatpush3.msra.mxu1 %v62_v56  ;;  %882 = vmatpush3.msra.mxu0 %v29_v57 }
  0x20   :  { %916 = vmatprep.subr.mxu1 %v77_v58  ;;  %883 = vmatprep.subr.mxu0 %v44_v59 }
  0x21   :  { %201 = vmatprep.mubr.f32.mxu0 %v22_v60  ;;  %884 = vmatpush3.msra.mxu0 %v28_v61 }
  0x22   :  { %917 = vmatpush3.msra.mxu1 %v61_v62  ;;  %202 = vmatmul.mubr.f32.vlgmr.msra.gmra.mxu0 %v21_v63 }
  0x23   :  { %918 = vmatprep.subr.mxu1 %v76_v0  ;;  %923 = vmatprep.subr.mxu0 %v123_v1 }
  0x24   :  { %919 = vmatpush3.msra.mxu1 %v60_v2  ;;  %271 = vmatprep.mubr.f32.mxu1 %v24_v3 }
  0x25   :  { %924 = vmatpush3.msra.mxu0 %v107_v4 }
  0x26   :  { %10 = vsyncpa [#allocation3], 0  ;;  %272 = vmatmul.mubr.f32.vlgmr.msra.gmra.mxu1 %v23_v5  ;;  %925 = vmatprep.subr.mxu0 %v122_v6  ;;  %v105_v10 = vld [vmem:[%s1584_s1 + $0x268] sm:$0xff]  ;;  %v120_v12 = vld [vmem:[%s1584_s1 + $0x2e0] sm:$0xff]  ;;  %v1035_v14 = vmov 0.0   ;;  %vm133_vm0 = vcmask 130048  }
  0x27   :  { %v125_v11 = vld [vmem:[%s1584_s1 + $0x308] sm:$0xff]  ;;  %926 = vmatpush3.msra.mxu0 %v106_v7  ;;  %341 = vmatprep.mubr.f32.mxu0 %v26_v8  ;;  %v104_v13 = vld [vmem:[%s1584_s1 + $0x260] sm:$0xff]  ;;  %v119_v16 = vld [vmem:[%s1584_s1 + $0x2d8] sm:$0xff]  ;;  %vm1036_vm1 = vmmov 0   ;;  %vm511_vm2 = vcmask 523264  }
  0x28   :  { %927 = vmatprep.subr.mxu0 %v121_v9  ;;  %970 = vmatprep.subr.mxu1 %v1035_v14  ;;  %v124_v15 = vld [vmem:[%s1584_s1 + $0x300] sm:$0xff]  ;;  %v103_v17 = vld [vmem:[%s1584_s1 + $0x258] sm:$0xff]  ;;  %v27_v18 = vld [vmem:[%s1583_s0 + $0x30] sm:$0xff] }
  0x29   :  { %928 = vmatpush3.msra.mxu0 %v105_v10  ;;  %971 = vmatpush3.msra.mxu1 %v125_v11  ;;  %v118_v19 = vld [vmem:[%s1584_s1 + $0x2d0] sm:$0xff]  ;;  %v117_v21 = vld [vmem:[%s1584_s1 + $0x2c8] sm:$0xff]  ;;  %v116_v23 = vld [vmem:[%s1584_s1 + $0x2c0] sm:$0xff] }
  0x2a   :  { %929 = vmatprep.subr.mxu0 %v120_v12  ;;  %972 = vmatprep.subr.mxu1 %v1035_v14  ;;  %v102_v20 = vld [vmem:[%s1584_s1 + $0x250] sm:$0xff]  ;;  %v101_v22 = vld [vmem:[%s1584_s1 + $0x248] sm:$0xff]  ;;  %v100_v24 = vld [vmem:[%s1584_s1 + $0x240] sm:$0xff] }
  0x2b   :  { %930 = vmatpush3.msra.mxu0 %v104_v13  ;;  %973 = vmatpush3.msra.mxu1 %v124_v15  ;;  %v115_v25 = vld [vmem:[%s1584_s1 + $0x2b8] sm:$0xff]  ;;  %v114_v27 = vld [vmem:[%s1584_s1 + $0x2b0] sm:$0xff]  ;;  %v113_v29 = vld [vmem:[%s1584_s1 + $0x2a8] sm:$0xff] }
  0x2c   :  { %931 = vmatprep.subr.mxu0 %v119_v16  ;;  %974 = vmatprep.mubr.msk.f32.mxu1 %vm1036_vm1, %v1035_v14  ;;  %v99_v26 = vld [vmem:[%s1584_s1 + $0x238] sm:$0xff]  ;;  %v98_v28 = vld [vmem:[%s1584_s1 + $0x230] sm:$0xff]  ;;  %v97_v30 = vld [vmem:[%s1584_s1 + $0x228] sm:$0xff] }
  0x2d   :  { %932 = vmatpush3.msra.mxu0 %v103_v17  ;;  %975 = vmatmul.mubr.msk.f32.vlgmr.msra.gmra.mxu1 %vm133_vm0, %v27_v18  ;;  %v112_v31 = vld [vmem:[%s1584_s1 + $0x2a0] sm:$0xff]  ;;  %v111_v33 = vld [vmem:[%s1584_s1 + $0x298] sm:$0xff]  ;;  %v110_v35 = vld [vmem:[%s1584_s1 + $0x290] sm:$0xff] }
  0x2e   :  { %933 = vmatprep.subr.mxu0 %v118_v19  ;;  %579 = vmatprep.mubr.f32.mxu1 %v1035_v14  ;;  %v96_v32 = vld [vmem:[%s1584_s1 + $0x220] sm:$0xff]  ;;  %v95_v34 = vld [vmem:[%s1584_s1 + $0x218] sm:$0xff]  ;;  %v94_v36 = vld [vmem:[%s1584_s1 + $0x210] sm:$0xff] }
  0x2f   :  { %934 = vmatpush3.msra.mxu0 %v102_v20  ;;  %v109_v37 = vld [vmem:[%s1584_s1 + $0x288] sm:$0xff]  ;;  %v108_v39 = vld [vmem:[%s1584_s1 + $0x280] sm:$0xff]  ;;  %v468_v42 = vld [vmem:[%s1586_s3 + $0x190] sm:$0xff] }
  0x30   :  { %935 = vmatprep.subr.mxu0 %v117_v21  ;;  %v93_v38 = vld [vmem:[%s1584_s1 + $0x208] sm:$0xff]  ;;  %v92_v40 = vld [vmem:[%s1584_s1 + $0x200] sm:$0xff]  ;;  %v472_v44 = vld [vmem:[%s1586_s3 + $0x1b0] sm:$0xff]  ;;  %531 = vmatprep.subr.mxu1 %v468_v42 }
  0x31   :  { %936 = vmatpush3.msra.mxu0 %v101_v22  ;;  %v25_v41 = vld [vmem:[%s1583_s0 + $0x20] sm:$0xff]  ;;  %v467_v43 = vld [vmem:[%s1586_s3 + $0x188] sm:$0xff]  ;;  %v461_v45 = vld [vmem:[%s1586_s3 + $0x158] sm:$0xff] }
  0x32   :  { %937 = vmatprep.subr.mxu0 %v116_v23  ;;  %v471_v46 = vld [vmem:[%s1586_s3 + $0x1a8] sm:$0xff]  ;;  %v460_v47 = vld [vmem:[%s1586_s3 + $0x150] sm:$0xff]  ;;  %532 = vmatpush1.msra.mxu1 %v467_v43  ;;  %v465_v48 = vld [vmem:[%s1586_s3 + $0x178] sm:$0xff] }
  0x33   :  { %938 = vmatpush3.msra.mxu0 %v100_v24  ;;  %v454_v49 = vld [vmem:[%s1586_s3 + $0x120] sm:$0xff]  ;;  %v464_v50 = vld [vmem:[%s1586_s3 + $0x170] sm:$0xff]  ;;  %533 = vmatprep.subr.mxu1 %v461_v45  ;;  %v453_v51 = vld [vmem:[%s1586_s3 + $0x118] sm:$0xff] }
  0x34   :  { %939 = vmatprep.subr.mxu0 %v115_v25  ;;  %v458_v52 = vld [vmem:[%s1586_s3 + $0x140] sm:$0xff]  ;;  %534 = vmatpush1.msra.mxu1 %v460_v47  ;;  %v447_v53 = vld [vmem:[%s1586_s3 + $0xe8] sm:$0xff]  ;;  %v457_v54 = vld [vmem:[%s1586_s3 + $0x138] sm:$0xff] }
  0x35   :  { %940 = vmatpush3.msra.mxu0 %v99_v26  ;;  %535 = vmatprep.subr.mxu1 %v454_v49  ;;  %v446_v55 = vld [vmem:[%s1586_s3 + $0xe0] sm:$0xff]  ;;  %v451_v56 = vld [vmem:[%s1586_s3 + $0x108] sm:$0xff]  ;;  %v440_v57 = vld [vmem:[%s1586_s3 + $0xb0] sm:$0xff] }
  0x36   :  { %941 = vmatprep.subr.mxu0 %v114_v27  ;;  %536 = vmatpush1.msra.mxu1 %v453_v51  ;;  %v450_v58 = vld [vmem:[%s1586_s3 + $0x100] sm:$0xff]  ;;  %v439_v59 = vld [vmem:[%s1586_s3 + $0xa8] sm:$0xff]  ;;  %v444_v60 = vld [vmem:[%s1586_s3 + $0xd0] sm:$0xff] }
  0x37   :  { %942 = vmatpush3.msra.mxu0 %v98_v28  ;;  %537 = vmatprep.subr.mxu1 %v447_v53  ;;  %v433_v61 = vld [vmem:[%s1586_s3 + $0x78] sm:$0xff]  ;;  %v443_v62 = vld [vmem:[%s1586_s3 + $0xc8] sm:$0xff]  ;;  %v432_v63 = vld [vmem:[%s1586_s3 + $0x70] sm:$0xff] }
  0x38   :  { %943 = vmatprep.subr.mxu0 %v113_v29  ;;  %538 = vmatpush1.msra.mxu1 %v446_v55  ;;  %v437_v0 = vld [vmem:[%s1586_s3 + $0x98] sm:$0xff]  ;;  %v426_v1 = vld [vmem:[%s1586_s3 + $0x40] sm:$0xff]  ;;  %v436_v2 = vld [vmem:[%s1586_s3 + $0x90] sm:$0xff] }
  0x39   :  { %944 = vmatpush3.msra.mxu0 %v97_v30  ;;  %539 = vmatprep.subr.mxu1 %v440_v57  ;;  %v425_v3 = vld [vmem:[%s1586_s3 + $0x38] sm:$0xff]  ;;  %v430_v4 = vld [vmem:[%s1586_s3 + $0x60] sm:$0xff]  ;;  %v419_v5 = vld [vmem:[%s1586_s3 + $0x8] sm:$0xff] }
  0x3a   :  { %945 = vmatprep.subr.mxu0 %v112_v31  ;;  %540 = vmatpush1.msra.mxu1 %v439_v59  ;;  %v429_v6 = vld [vmem:[%s1586_s3 + $0x58] sm:$0xff]  ;;  %v418_v7 = vld [vmem:[%s1586_s3] sm:$0xff]  ;;  %v423_v8 = vld [vmem:[%s1586_s3 + $0x28] sm:$0xff] }
  0x3b   :  { %946 = vmatpush3.msra.mxu0 %v96_v32  ;;  %541 = vmatprep.subr.mxu1 %v433_v61  ;;  %v470_v9 = vld [vmem:[%s1586_s3 + $0x1a0] sm:$0xff]  ;;  %v469_v29 = vld [vmem:[%s1586_s3 + $0x198] sm:$0xff]  ;;  %v463_v30 = vld [vmem:[%s1586_s3 + $0x168] sm:$0xff] }
  0x3c   :  { %947 = vmatprep.subr.mxu0 %v111_v33  ;;  %542 = vmatpush1.msra.mxu1 %v432_v63  ;;  %v422_v10 = vld [vmem:[%s1586_s3 + $0x20] sm:$0xff]  ;;  %v456_v32 = vld [vmem:[%s1586_s3 + $0x130] sm:$0xff]  ;;  %v455_v33 = vld [vmem:[%s1586_s3 + $0x128] sm:$0xff] }
  0x3d   :  { %948 = vmatpush3.msra.mxu0 %v95_v34  ;;  %543 = vmatprep.subr.mxu1 %v426_v1  ;;  %v847_v19 = vld [vmem:[%s1585_s2] ss:$0 sm:$0xff]  ;;  %v449_v34 = vld [vmem:[%s1586_s3 + $0xf8] sm:$0xff]  ;;  %v420_v43 = vld [vmem:[%s1586_s3 + $0x10] sm:$0xff] }
  0x3e   :  { %949 = vmatprep.subr.mxu0 %v110_v35  ;;  %544 = vmatpush1.msra.mxu1 %v425_v3  ;;  %v462_v31 = vld [vmem:[%s1586_s3 + $0x160] sm:$0xff]  ;;  %v448_v35 = vld [vmem:[%s1586_s3 + $0xf0] sm:$0xff]  ;;  %v421_v42 = vld [vmem:[%s1586_s3 + $0x18] sm:$0xff] }
  0x3f   :  { %950 = vmatpush3.msra.mxu0 %v94_v36  ;;  %545 = vmatprep.subr.mxu1 %v419_v5  ;;  %v442_v36 = vld [vmem:[%s1586_s3 + $0xc0] sm:$0xff]  ;;  %v452_v47 = vld [vmem:[%s1586_s3 + $0x110] sm:$0xff] }
  0x40   :  { %951 = vmatprep.subr.mxu0 %v109_v37  ;;  %546 = vmatpush1.msra.mxu1 %v418_v7  ;;  %v441_v37 = vld [vmem:[%s1586_s3 + $0xb8] sm:$0xff]  ;;  %v466_v45 = vld [vmem:[%s1586_s3 + $0x180] sm:$0xff]  ;;  %v424_v51 = vld [vmem:[%s1586_s3 + $0x30] sm:$0xff] }
  0x41   :  { %952 = vmatpush3.msra.mxu0 %v93_v38  ;;  %602 = vmatprep.subr.mxu1 %v470_v9  ;;  %v435_v38 = vld [vmem:[%s1586_s3 + $0x88] sm:$0xff]  ;;  %v438_v49 = vld [vmem:[%s1586_s3 + $0xa0] sm:$0xff] }
  0x42   :  { %953 = vmatprep.subr.mxu0 %v108_v39  ;;  %v434_v39 = vld [vmem:[%s1586_s3 + $0x80] sm:$0xff] }
  0x43   :  { %954 = vmatpush3.msra.mxu0 %v92_v40  ;;  %v428_v40 = vld [vmem:[%s1586_s3 + $0x50] sm:$0xff] }
  0x44   :  { %342 = vmatmul.mubr.f32.vlgmr.msra.gmra.mxu0 %v25_v41  ;;  %673 = vmatprep.subr.mxu0 %v472_v44  ;;  %v427_v41 = vld [vmem:[%s1586_s3 + $0x48] sm:$0xff]  ;;  %v473_v44 = vld [vmem:[%s1586_s3 + $0x1b8] sm:$0xff] }
  0x45   :  { %721 = vmatprep.mubr.f32.mxu0 %v1035_v14  ;;  %674 = vmatpush1.msra.mxu0 %v471_v46  ;;  %v459_v46 = vld [vmem:[%s1586_s3 + $0x148] sm:$0xff] }
  0x46   :  { %675 = vmatprep.subr.mxu0 %v465_v48  ;;  %v445_v48 = vld [vmem:[%s1586_s3 + $0xd8] sm:$0xff] }
  0x47   :  { %676 = vmatpush1.msra.mxu0 %v464_v50  ;;  %v431_v50 = vld [vmem:[%s1586_s3 + $0x68] sm:$0xff]  ;;  %s1037_s3 = smov [#allocation2]  }
  0x48   :  { %677 = vmatprep.subr.mxu0 %v458_v52  ;;  %v476_v52 = vlaneseq }
  0x49   :  { %678 = vmatpush1.msra.mxu0 %v457_v54 }
  0x4a   :  { %679 = vmatprep.subr.mxu0 %v451_v56  ;;  %v477_v53 = vshrl.u32 %v476_v52, 7  ;;  %v474_v56 = vld [vmem:[%s1587_s4] sm:$0x7f]  ;;  %s839_s4 = sshll.u32 %s1037_s3, 4  ;;  %s840_s4 = int_to_ptr.vmem [resolvable:$true] %s839_s4 }
  0x4b   :  { %680 = vmatpush1.msra.mxu0 %v450_v58  ;;  %s1013_s0 = scalar_lea.vmem %s840_s4, 896  ;;  %p1018_p1 = scmp.lt.s32.totalorder %s840_s4, %s840_s4 }
  0x4c   :  { %681 = vmatprep.subr.mxu0 %v444_v60  ;;  %v478_v54 = vsub.s32 0, %v477_v53  ;;  %v494_v55 = vsub.s32 4, %v477_v53  ;;  %v482_v57 = vsub.s32 1, %v477_v53  ;;  %v498_v58 = vsub.s32 5, %v477_v53  ;;  %p1014_p0 = scmp.ne.s32.totalorder %s840_s4, %s1013_s0  ;;  %p1019_p2 = scmp.lt.s32.totalorder %s1013_s0, %s1013_s0 }
  0x4d   :  { %682 = vmatpush1.msra.mxu0 %v443_v62 }
  0x4e   :  { %683 = vmatprep.subr.mxu0 %v437_v0  ;;  %v479_v59 = vrot.slane %v474_v56, %v478_v54  ;;  %v495_v60 = vrot.slane %v474_v56, %v494_v55  ;;  %v483_v61 = vrot.slane %v474_v56, %v482_v57  ;;  %v499_v62 = vrot.slane %v474_v56, %v498_v58  ;;  %p1020_p3 = por %p1019_p2, %p1018_p1 }
  0x4f   :  { %684 = vmatpush1.msra.mxu0 %v436_v2 }
  0x50   :  { %685 = vmatprep.subr.mxu0 %v430_v4  ;;  %p1021_p4 = pnand %p1020_p3, %p1014_p0 }
  0x51   :  { %686 = vmatpush1.msra.mxu0 %v429_v6 }
  0x52   :  { %687 = vmatprep.subr.mxu0 %v423_v8 }
  0x53   :  { %688 = vmatpush1.msra.mxu0 %v422_v10  ;;  %v486_v10 = vsub.s32 2, %v477_v53 }
  0xe2   :  { %v885_v16 = vpop.f32.mrf.mxu0 }
  0xe4   :  { %v886_v17 = vpop.f32.mrf.mxu0 }
  0xe5   :  { %v887_v18 = vadd.f32 %v886_v17, %v885_v16 }
  0xe6   :  { %v920_v11 = vpop.f32.mrf.mxu1 }
  0xe7   :  { %v204_v20 = vadd.f32 %v887_v18, %v847_v19 }
  0xe8   :  { %v921_v12 = vpop.f32.mrf.mxu1 }
  0xe9   :  { %v922_v21 = vadd.f32 %v921_v12, %v920_v11  ;;  %v490_v11 = vsub.s32 3, %v477_v53  ;;  %v487_v12 = vrot.slane %v474_v56, %v486_v10 }
  0xeb   :  { %v274_v24 = vadd.f32 %v922_v21, %v204_v20 }
  0xed   :  { %v413_v13 = vpop.f32.mrf.mxu1 }
  0xef   :  { %v976_v15 = vpop.f32.mrf.mxu1 }
 0x104   :  { %v955_v22 = vpop.f32.mrf.mxu0 }
 0x106   :  { %v956_v23 = vpop.f32.mrf.mxu0 }
 0x107   :  { %v957_v25 = vadd.f32 %v956_v23, %v955_v22 }
 0x109   :  { %v344_v26 = vadd.f32 %v957_v25, %v274_v24 }
 0x10b   :  { %v414_v27 = vadd.f32 %v413_v13, %v344_v26  ;;  %v491_v13 = vrot.slane %v474_v56, %v490_v11 }
 0x10d   :  { %v417_v28 = vmax.f32 %v414_v27, 0.0 }
 0x10f   :  { %849 = vmatmul.mubr.msk.f32.vlgmr.msra.gmra.mxu1 %vm511_vm2, %v417_v28  ;;  %851 = vmatmul.mubr.msk.f32.vlgmr.msra.gmra.mxu0 %vm511_vm2, %v417_v28 }
 0x110   :  { %603 = vmatpush1.msra.mxu1 %v469_v29  ;;  %650 = vmatprep.mubr.f32.mxu1 %v1035_v14 }
 0x111   :  { %604 = vmatprep.subr.mxu1 %v463_v30 }
 0x112   :  { %605 = vmatpush1.msra.mxu1 %v462_v31 }
 0x113   :  { %606 = vmatprep.subr.mxu1 %v456_v32 }
 0x114   :  { %607 = vmatpush1.msra.mxu1 %v455_v33  ;;  %v502_v33 = vsub.s32 6, %v477_v53 }
 0x115   :  { %608 = vmatprep.subr.mxu1 %v449_v34 }
 0x116   :  { %609 = vmatpush1.msra.mxu1 %v448_v35  ;;  %v503_v34 = vrot.slane %v474_v56, %v502_v33 }
 0x117   :  { %610 = vmatprep.subr.mxu1 %v442_v36 }
 0x118   :  { %611 = vmatpush1.msra.mxu1 %v441_v37 }
 0x119   :  { %612 = vmatprep.subr.mxu1 %v435_v38 }
 0x11a   :  { %613 = vmatpush1.msra.mxu1 %v434_v39 }
 0x11b   :  { %614 = vmatprep.subr.mxu1 %v428_v40 }
 0x11c   :  { %615 = vmatpush1.msra.mxu1 %v427_v41 }
 0x11d   :  { %616 = vmatprep.subr.mxu1 %v421_v42 }
 0x11e   :  { %617 = vmatpush1.msra.mxu1 %v420_v43 }
 0x11f   :  { %850 = vmatmul.mubr.msk.f32.vlgmr.msra.gmra.mxu1 %vm511_vm2, %v417_v28  ;;  %977 = vmatprep.subr.mxu1 %v1035_v14 }
 0x120   :  { %978 = vmatpush3.msra.mxu1 %v473_v44  ;;  %993 = vmatprep.mubr.msk.f32.mxu1 %vm1036_vm1, %v1035_v14 }
 0x121   :  { %979 = vmatprep.subr.mxu1 %v1035_v14 }
 0x122   :  { %980 = vmatpush3.msra.mxu1 %v466_v45 }
 0x123   :  { %981 = vmatprep.subr.mxu1 %v1035_v14 }
 0x124   :  { %982 = vmatpush3.msra.mxu1 %v459_v46 }
 0x125   :  { %983 = vmatprep.subr.mxu1 %v1035_v14 }
 0x126   :  { %984 = vmatpush3.msra.mxu1 %v452_v47 }
 0x127   :  { %985 = vmatprep.subr.mxu1 %v1035_v14 }
 0x128   :  { %986 = vmatpush3.msra.mxu1 %v445_v48 }
 0x129   :  { %987 = vmatprep.subr.mxu1 %v1035_v14 }
 0x12a   :  { %988 = vmatpush3.msra.mxu1 %v438_v49 }
 0x12b   :  { %989 = vmatprep.subr.mxu1 %v1035_v14 }
 0x12c   :  { %990 = vmatpush3.msra.mxu1 %v431_v50 }
 0x12d   :  { %991 = vmatprep.subr.mxu1 %v1035_v14 }
 0x12e   :  { %992 = vmatpush3.msra.mxu1 %v424_v51 }
 0x12f   :  { %994 = vmatmul.mubr.msk.f32.vlgmr.msra.gmra.mxu1 %vm511_vm2, %v417_v28 }
 0x1cf   :  { %v581_v63 = vpop.f32.mrf.mxu1  ;;  %v723_v0 = vpop.f32.mrf.mxu0 }
 0x1d0   :  { %v582_v14 = vadd.f32 %v581_v63, %v479_v59  ;;  %v724_v1 = vadd.f32 %v723_v0, %v495_v60 }
 0x1d1   :  { %v583_v2 = vpop.f32.mrf.mxu1  ;;  %v725_v3 = vpop.f32.mrf.mxu0 }
 0x1d2   :  { %v798_v4 = vmul.f32 0.5, %v582_v14  ;;  %v802_v5 = vmul.f32 0.5, %v724_v1  ;;  %v584_v6 = vadd.f32 %v583_v2, %v483_v61  ;;  %v726_v7 = vadd.f32 %v725_v3, %v499_v62 }
 0x1d4   :  { %999 = vtanh.f32 %v798_v4  ;;  %v799_v8 = vmul.f32 0.5, %v584_v6  ;;  %v803_v9 = vmul.f32 0.5, %v726_v7 }
 0x1d5   :  { %1001 = vtanh.f32 %v802_v5 }
 0x1d6   :  { %1003 = vtanh.f32 %v799_v8 }
 0x1d7   :  { %1005 = vtanh.f32 %v803_v9 }
 0x1df   :  { %v652_v15 = vpop.f32.mrf.mxu1 }
 0x1e0   :  { %v653_v16 = vadd.f32 %v652_v15, %v487_v12 }
 0x1e1   :  { %v1000_v17 = vpop.eup %999  ;;  %v654_v18 = vpop.f32.mrf.mxu1 }
 0x1e2   :  { %v1002_v19 = vpop.eup %1001  ;;  %v812_v20 = vadd.f32 1.0, %v1000_v17  ;;  %v800_v21 = vmul.f32 0.5, %v653_v16  ;;  %v655_v22 = vadd.f32 %v654_v18, %v491_v13 }
 0x1e3   :  { %v1004_v23 = vpop.eup %1003  ;;  %v816_v24 = vadd.f32 1.0, %v1002_v19 }
 0x1e4   :  { %v1006_v25 = vpop.eup %1005  ;;  %v819_v26 = vmul.f32 0.5, %v812_v20  ;;  %v813_v27 = vadd.f32 1.0, %v1004_v23  ;;  %1007 = vtanh.f32 %v800_v21  ;;  %v801_v28 = vmul.f32 0.5, %v655_v22 }
 0x1e5   :  { %v823_v29 = vmul.f32 0.5, %v816_v24  ;;  %v817_v30 = vadd.f32 1.0, %v1006_v25 }
 0x1e6   :  { %826 = vst [vmem:[#allocation2] sm:$0xff] %v819_v26  ;;  %v820_v31 = vmul.f32 0.5, %v813_v27  ;;  %1009 = vtanh.f32 %v801_v28 }
 0x1e7   :  { %830 = vst [vmem:[#allocation2 + $0x20] sm:$0xff] %v823_v29  ;;  %v824_v32 = vmul.f32 0.5, %v817_v30 }
 0x1e8   :  { %827 = vst [vmem:[#allocation2 + $0x8] sm:$0xff] %v820_v31 }
 0x1e9   :  { %831 = vst [vmem:[#allocation2 + $0x28] sm:$0xff] %v824_v32 }
 0x1ef   :  { %v794_v35 = vpop.f32.mrf.mxu1 }
 0x1f0   :  { %v795_v36 = vadd.f32 %v794_v35, %v503_v34 }
 0x1f1   :  { %v1008_v37 = vpop.eup %1007  ;;  %v995_v38 = vpop.f32.mrf.mxu1 }
 0x1f2   :  { %v814_v39 = vadd.f32 1.0, %v1008_v37  ;;  %v804_v40 = vmul.f32 0.5, %v795_v36 }
 0x1f3   :  { %v1010_v41 = vpop.eup %1009 }
 0x1f4   :  { %v821_v42 = vmul.f32 0.5, %v814_v39  ;;  %v815_v43 = vadd.f32 1.0, %v1010_v41  ;;  %1011 = vtanh.f32 %v804_v40 }
 0x1f6   :  { %828 = vst [vmem:[#allocation2 + $0x10] sm:$0xff] %v821_v42  ;;  %v822_v44 = vmul.f32 0.5, %v815_v43 }
 0x1f8   :  { %829 = vst [vmem:[#allocation2 + $0x18] sm:$0xff] %v822_v44 }
 0x201   :  { %v1012_v45 = vpop.eup %1011 }
 0x202   :  { %v818_v46 = vadd.f32 1.0, %v1012_v45 }
 0x204   :  { %v825_v47 = vmul.f32 0.5, %v818_v46 }
 0x206   :  { %832 = vst.msk [vmem:[#allocation2 + $0x30] sm:$0xff] %vm133_vm0, %v825_v47 }
 0x207   :  { %1024 = shalt.err (!%p1021_p4)
}
 0x208   :  { %842 = dma.vmem_to_hbm [thread:$0]  %s840_s4, 896, %s1588_s5, [#allocation3]  }
 0x209   :  { %1033 = dma.done.wait [#allocation3], 896  }
 0x20a   :  { %1034 = vsyncadd [#allocation3], 4294966400 }
 0x20b   :  { %846 = vsyncpa [#allocation3], 1 }

// kernel: autoencoder_forward.1
= control target key start
LH: loop header
LB: loop body
LE: loop exit
PB: predicated region body
PF: predicated region fallthrough
CT: control target
= control target key end

     0   :  { %s1583_s0 = inlined_call_operand.vmem [shape: f32[8,784], index: 0, kind: input, shape index: {}]   ;;  %s1584_s1 = inlined_call_operand.vmem [shape: f32[784,64], index: 1, kind: input, shape index: {}]   ;;  %s1585_s2 = inlined_call_operand.vmem [shape: f32[1,64], index: 2, kind: input, shape index: {}]   ;;  %s1586_s3 = inlined_call_operand.vmem [shape: f32[64,784], index: 3, kind: input, shape index: {}]   ;;  %s1587_s4 = inlined_call_operand.vmem [shape: f32[1,784], index: 4, kind: input, shape index: {}]   ;;  %s1588_s5 = inlined_call_operand.hbm [shape: f32[8,784], index: 5, kind: output, shape index: {}]  }
   0x1   :  { %v59_v0 = vld [vmem:[%s1584_s1 + $0xf8] sm:$0xff]  ;;  %v58_v2 = vld [vmem:[%s1584_s1 + $0xf0] sm:$0xff]  ;;  %v57_v6 = vld [vmem:[%s1584_s1 + $0xe8] sm:$0xff] }
   0x2   :  { %v43_v1 = vld [vmem:[%s1584_s1 + $0x78] sm:$0xff]  ;;  %853 = vmatprep.subr.mxu0 %v59_v0  ;;  %v42_v4 = vld [vmem:[%s1584_s1 + $0x70] sm:$0xff]  ;;  %v41_v8 = vld [vmem:[%s1584_s1 + $0x68] sm:$0xff] }
   0x3   :  { %v91_v3 = vld [vmem:[%s1584_s1 + $0x1f8] sm:$0xff]  ;;  %854 = vmatpush3.msra.mxu0 %v43_v1  ;;  %v90_v7 = vld [vmem:[%s1584_s1 + $0x1f0] sm:$0xff]  ;;  %v89_v10 = vld [vmem:[%s1584_s1 + $0x1e8] sm:$0xff] }
   0x4   :  { %v75_v5 = vld [vmem:[%s1584_s1 + $0x178] sm:$0xff]  ;;  %888 = vmatprep.subr.mxu1 %v91_v3  ;;  %855 = vmatprep.subr.mxu0 %v58_v2  ;;  %v74_v9 = vld [vmem:[%s1584_s1 + $0x170] sm:$0xff]  ;;  %v56_v11 = vld [vmem:[%s1584_s1 + $0xe0] sm:$0xff] }
   0x5   :  { %889 = vmatpush3.msra.mxu1 %v75_v5  ;;  %856 = vmatpush3.msra.mxu0 %v42_v4  ;;  %v73_v12 = vld [vmem:[%s1584_s1 + $0x168] sm:$0xff]  ;;  %v40_v13 = vld [vmem:[%s1584_s1 + $0x60] sm:$0xff]  ;;  %v55_v15 = vld [vmem:[%s1584_s1 + $0xd8] sm:$0xff] }
   0x6   :  { %890 = vmatprep.subr.mxu1 %v90_v7  ;;  %857 = vmatprep.subr.mxu0 %v57_v6  ;;  %v88_v14 = vld [vmem:[%s1584_s1 + $0x1e0] sm:$0xff]  ;;  %v39_v17 = vld [vmem:[%s1584_s1 + $0x58] sm:$0xff]  ;;  %v54_v19 = vld [vmem:[%s1584_s1 + $0xd0] sm:$0xff] }
   0x7   :  { %891 = vmatpush3.msra.mxu1 %v74_v9  ;;  %858 = vmatpush3.msra.mxu0 %v41_v8  ;;  %v72_v16 = vld [vmem:[%s1584_s1 + $0x160] sm:$0xff]  ;;  %v87_v18 = vld [vmem:[%s1584_s1 + $0x1d8] sm:$0xff]  ;;  %v38_v21 = vld [vmem:[%s1584_s1 + $0x50] sm:$0xff] }
   0x8   :  { %892 = vmatprep.subr.mxu1 %v89_v10  ;;  %859 = vmatprep.subr.mxu0 %v56_v11  ;;  %v71_v20 = vld [vmem:[%s1584_s1 + $0x158] sm:$0xff]  ;;  %v86_v22 = vld [vmem:[%s1584_s1 + $0x1d0] sm:$0xff]  ;;  %v53_v23 = vld [vmem:[%s1584_s1 + $0xc8] sm:$0xff] }
   0x9   :  { %893 = vmatpush3.msra.mxu1 %v73_v12  ;;  %860 = vmatpush3.msra.mxu0 %v40_v13  ;;  %v70_v24 = vld [vmem:[%s1584_s1 + $0x150] sm:$0xff]  ;;  %v37_v25 = vld [vmem:[%s1584_s1 + $0x48] sm:$0xff]  ;;  %v52_v27 = vld [vmem:[%s1584_s1 + $0xc0] sm:$0xff] }
   0xa   :  { %894 = vmatprep.subr.mxu1 %v88_v14  ;;  %861 = vmatprep.subr.mxu0 %v55_v15  ;;  %v85_v26 = vld [vmem:[%s1584_s1 + $0x1c8] sm:$0xff]  ;;  %v36_v29 = vld [vmem:[%s1584_s1 + $0x40] sm:$0xff]  ;;  %v51_v31 = vld [vmem:[%s1584_s1 + $0xb8] sm:$0xff] }
   0xb   :  { %895 = vmatpush3.msra.mxu1 %v72_v16  ;;  %862 = vmatpush3.msra.mxu0 %v39_v17  ;;  %v69_v28 = vld [vmem:[%s1584_s1 + $0x148] sm:$0xff]  ;;  %v84_v30 = vld [vmem:[%s1584_s1 + $0x1c0] sm:$0xff]  ;;  %v35_v33 = vld [vmem:[%s1584_s1 + $0x38] sm:$0xff] }
   0xc   :  { %896 = vmatprep.subr.mxu1 %v87_v18  ;;  %863 = vmatprep.subr.mxu0 %v54_v19  ;;  %v68_v32 = vld [vmem:[%s1584_s1 + $0x140] sm:$0xff]  ;;  %v83_v34 = vld [vmem:[%s1584_s1 + $0x1b8] sm:$0xff]  ;;  %v50_v35 = vld [vmem:[%s1584_s1 + $0xb0] sm:$0xff] }
   0xd   :  { %897 = vmatpush3.msra.mxu1 %v71_v20  ;;  %864 = vmatpush3.msra.mxu0 %v38_v21  ;;  %v67_v36 = vld [vmem:[%s1584_s1 + $0x138] sm:$0xff]  ;;  %v34_v37 = vld [vmem:[%s1584_s1 + $0x30] sm:$0xff]  ;;  %v49_v39 = vld [vmem:[%s1584_s1 + $0xa8] sm:$0xff] }
   0xe   :  { %898 = vmatprep.subr.mxu1 %v86_v22  ;;  %865 = vmatprep.subr.mxu0 %v53_v23  ;;  %v82_v38 = vld [vmem:[%s1584_s1 + $0x1b0] sm:$0xff]  ;;  %v33_v41 = vld [vmem:[%s1584_s1 + $0x28] sm:$0xff]  ;;  %v48_v43 = vld [vmem:[%s1584_s1 + $0xa0] sm:$0xff] }
   0xf   :  { %899 = vmatpush3.msra.mxu1 %v70_v24  ;;  %866 = vmatpush3.msra.mxu0 %v37_v25  ;;  %v66_v40 = vld [vmem:[%s1584_s1 + $0x130] sm:$0xff]  ;;  %v81_v42 = vld [vmem:[%s1584_s1 + $0x1a8] sm:$0xff]  ;;  %v32_v45 = vld [vmem:[%s1584_s1 + $0x20] sm:$0xff] }
  0x10   :  { %900 = vmatprep.subr.mxu1 %v85_v26  ;;  %867 = vmatprep.subr.mxu0 %v52_v27  ;;  %v65_v44 = vld [vmem:[%s1584_s1 + $0x128] sm:$0xff]  ;;  %v80_v46 = vld [vmem:[%s1584_s1 + $0x1a0] sm:$0xff]  ;;  %v47_v47 = vld [vmem:[%s1584_s1 + $0x98] sm:$0xff] }
  0x11   :  { %901 = vmatpush3.msra.mxu1 %v69_v28  ;;  %868 = vmatpush3.msra.mxu0 %v36_v29  ;;  %v64_v48 = vld [vmem:[%s1584_s1 + $0x120] sm:$0xff]  ;;  %v31_v49 = vld [vmem:[%s1584_s1 + $0x18] sm:$0xff]  ;;  %v46_v51 = vld [vmem:[%s1584_s1 + $0x90] sm:$0xff] }
  0x12   :  { %902 = vmatprep.subr.mxu1 %v84_v30  ;;  %869 = vmatprep.subr.mxu0 %v51_v31  ;;  %v79_v50 = vld [vmem:[%s1584_s1 + $0x198] sm:$0xff]  ;;  %v30_v53 = vld [vmem:[%s1584_s1 + $0x10] sm:$0xff]  ;;  %v45_v55 = vld [vmem:[%s1584_s1 + $0x88] sm:$0xff] }
  0x13   :  { %903 = vmatpush3.msra.mxu1 %v68_v32  ;;  %870 = vmatpush3.msra.mxu0 %v35_v33  ;;  %v63_v52 = vld [vmem:[%s1584_s1 + $0x118] sm:$0xff]  ;;  %v78_v54 = vld [vmem:[%s1584_s1 + $0x190] sm:$0xff]  ;;  %v29_v57 = vld [vmem:[%s1584_s1 + $0x8] sm:$0xff] }
  0x14   :  { %904 = vmatprep.subr.mxu1 %v83_v34  ;;  %871 = vmatprep.subr.mxu0 %v50_v35  ;;  %v62_v56 = vld [vmem:[%s1584_s1 + $0x110] sm:$0xff]  ;;  %v77_v58 = vld [vmem:[%s1584_s1 + $0x188] sm:$0xff]  ;;  %v44_v59 = vld [vmem:[%s1584_s1 + $0x80] sm:$0xff] }
  0x15   :  { %905 = vmatpush3.msra.mxu1 %v67_v36  ;;  %872 = vmatpush3.msra.mxu0 %v34_v37  ;;  %v22_v60 = vld [vmem:[%s1583_s0 + $0x8] sm:$0xff]  ;;  %v28_v61 = vld [vmem:[%s1584_s1] sm:$0xff]  ;;  %v123_v1 = vld [vmem:[%s1584_s1 + $0x2f8] sm:$0xff] }
  0x16   :  { %906 = vmatprep.subr.mxu1 %v82_v38  ;;  %873 = vmatprep.subr.mxu0 %v49_v39  ;;  %v61_v62 = vld [vmem:[%s1584_s1 + $0x108] sm:$0xff]  ;;  %v21_v63 = vld [vmem:[%s1583_s0] sm:$0xff]  ;;  %v24_v3 = vld [vmem:[%s1583_s0 + $0x18] sm:$0xff] }
  0x17   :  { %907 = vmatpush3.msra.mxu1 %v66_v40  ;;  %874 = vmatpush3.msra.mxu0 %v33_v41  ;;  %v76_v0 = vld [vmem:[%s1584_s1 + $0x180] sm:$0xff]  ;;  %v107_v4 = vld [vmem:[%s1584_s1 + $0x278] sm:$0xff]  ;;  %v23_v5 = vld [vmem:[%s1583_s0 + $0x10] sm:$0xff] }
  0x18   :  { %908 = vmatprep.subr.mxu1 %v81_v42  ;;  %875 = vmatprep.subr.mxu0 %v48_v43  ;;  %v60_v2 = vld [vmem:[%s1584_s1 + $0x100] sm:$0xff]  ;;  %v122_v6 = vld [vmem:[%s1584_s1 + $0x2f0] sm:$0xff]  ;;  %v26_v8 = vld [vmem:[%s1583_s0 + $0x28] sm:$0xff] }
  0x19   :  { %909 = vmatpush3.msra.mxu1 %v65_v44  ;;  %876 = vmatpush3.msra.mxu0 %v32_v45  ;;  %v106_v7 = vld [vmem:[%s1584_s1 + $0x270] sm:$0xff]  ;;  %v121_v9 = vld [vmem:[%s1584_s1 + $0x2e8] sm:$0xff] }
  0x1a   :  { %910 = vmatprep.subr.mxu1 %v80_v46  ;;  %877 = vmatprep.subr.mxu0 %v47_v47 }
  0x1b   :  { %911 = vmatpush3.msra.mxu1 %v64_v48  ;;  %878 = vmatpush3.msra.mxu0 %v31_v49 }
  0x1c   :  { %912 = vmatprep.subr.mxu1 %v79_v50  ;;  %879 = vmatprep.subr.mxu0 %v46_v51 }
  0x1d   :  { %913 = vmatpush3.msra.mxu1 %v63_v52  ;;  %880 = vmatpush3.msra.mxu0 %v30_v53 }
  0x1e   :  { %914 = vmatprep.subr.mxu1 %v78_v54  ;;  %881 = vmatprep.subr.mxu0 %v45_v55 }
  0x1f   :  { %915 = vmatpush3.msra.mxu1 %v62_v56  ;;  %882 = vmatpush3.msra.mxu0 %v29_v57 }
  0x20   :  { %916 = vmatprep.subr.mxu1 %v77_v58  ;;  %883 = vmatprep.subr.mxu0 %v44_v59 }
  0x21   :  { %201 = vmatprep.mubr.f32.mxu0 %v22_v60  ;;  %884 = vmatpush3.msra.mxu0 %v28_v61 }
  0x22   :  { %917 = vmatpush3.msra.mxu1 %v61_v62  ;;  %202 = vmatmul.mubr.f32.vlgmr.msra.gmra.mxu0 %v21_v63 }
  0x23   :  { %918 = vmatprep.subr.mxu1 %v76_v0  ;;  %923 = vmatprep.subr.mxu0 %v123_v1 }
  0x24   :  { %919 = vmatpush3.msra.mxu1 %v60_v2  ;;  %271 = vmatprep.mubr.f32.mxu1 %v24_v3 }
  0x25   :  { %924 = vmatpush3.msra.mxu0 %v107_v4 }
  0x26   :  { %10 = vsyncpa [#allocation3], 0  ;;  %272 = vmatmul.mubr.f32.vlgmr.msra.gmra.mxu1 %v23_v5  ;;  %925 = vmatprep.subr.mxu0 %v122_v6  ;;  %v105_v10 = vld [vmem:[%s1584_s1 + $0x268] sm:$0xff]  ;;  %v120_v12 = vld [vmem:[%s1584_s1 + $0x2e0] sm:$0xff]  ;;  %v1035_v14 = vmov 0.0   ;;  %vm133_vm0 = vcmask 130048  }
  0x27   :  { %v125_v11 = vld [vmem:[%s1584_s1 + $0x308] sm:$0xff]  ;;  %926 = vmatpush3.msra.mxu0 %v106_v7  ;;  %341 = vmatprep.mubr.f32.mxu0 %v26_v8  ;;  %v104_v13 = vld [vmem:[%s1584_s1 + $0x260] sm:$0xff]  ;;  %v119_v16 = vld [vmem:[%s1584_s1 + $0x2d8] sm:$0xff]  ;;  %vm1036_vm1 = vmmov 0   ;;  %vm511_vm2 = vcmask 523264  }
  0x28   :  { %927 = vmatprep.subr.mxu0 %v121_v9  ;;  %970 = vmatprep.subr.mxu1 %v1035_v14  ;;  %v124_v15 = vld [vmem:[%s1584_s1 + $0x300] sm:$0xff]  ;;  %v103_v17 = vld [vmem:[%s1584_s1 + $0x258] sm:$0xff]  ;;  %v27_v18 = vld [vmem:[%s1583_s0 + $0x30] sm:$0xff] }
  0x29   :  { %928 = vmatpush3.msra.mxu0 %v105_v10  ;;  %971 = vmatpush3.msra.mxu1 %v125_v11  ;;  %v118_v19 = vld [vmem:[%s1584_s1 + $0x2d0] sm:$0xff]  ;;  %v117_v21 = vld [vmem:[%s1584_s1 + $0x2c8] sm:$0xff]  ;;  %v116_v23 = vld [vmem:[%s1584_s1 + $0x2c0] sm:$0xff] }
  0x2a   :  { %929 = vmatprep.subr.mxu0 %v120_v12  ;;  %972 = vmatprep.subr.mxu1 %v1035_v14  ;;  %v102_v20 = vld [vmem:[%s1584_s1 + $0x250] sm:$0xff]  ;;  %v101_v22 = vld [vmem:[%s1584_s1 + $0x248] sm:$0xff]  ;;  %v100_v24 = vld [vmem:[%s1584_s1 + $0x240] sm:$0xff] }
  0x2b   :  { %930 = vmatpush3.msra.mxu0 %v104_v13  ;;  %973 = vmatpush3.msra.mxu1 %v124_v15  ;;  %v115_v25 = vld [vmem:[%s1584_s1 + $0x2b8] sm:$0xff]  ;;  %v114_v27 = vld [vmem:[%s1584_s1 + $0x2b0] sm:$0xff]  ;;  %v113_v29 = vld [vmem:[%s1584_s1 + $0x2a8] sm:$0xff] }
  0x2c   :  { %931 = vmatprep.subr.mxu0 %v119_v16  ;;  %974 = vmatprep.mubr.msk.f32.mxu1 %vm1036_vm1, %v1035_v14  ;;  %v99_v26 = vld [vmem:[%s1584_s1 + $0x238] sm:$0xff]  ;;  %v98_v28 = vld [vmem:[%s1584_s1 + $0x230] sm:$0xff]  ;;  %v97_v30 = vld [vmem:[%s1584_s1 + $0x228] sm:$0xff] }
  0x2d   :  { %932 = vmatpush3.msra.mxu0 %v103_v17  ;;  %975 = vmatmul.mubr.msk.f32.vlgmr.msra.gmra.mxu1 %vm133_vm0, %v27_v18  ;;  %v112_v31 = vld [vmem:[%s1584_s1 + $0x2a0] sm:$0xff]  ;;  %v111_v33 = vld [vmem:[%s1584_s1 + $0x298] sm:$0xff]  ;;  %v110_v35 = vld [vmem:[%s1584_s1 + $0x290] sm:$0xff] }
  0x2e   :  { %933 = vmatprep.subr.mxu0 %v118_v19  ;;  %579 = vmatprep.mubr.f32.mxu1 %v1035_v14  ;;  %v96_v32 = vld [vmem:[%s1584_s1 + $0x220] sm:$0xff]  ;;  %v95_v34 = vld [vmem:[%s1584_s1 + $0x218] sm:$0xff]  ;;  %v94_v36 = vld [vmem:[%s1584_s1 + $0x210] sm:$0xff] }
  0x2f   :  { %934 = vmatpush3.msra.mxu0 %v102_v20  ;;  %v109_v37 = vld [vmem:[%s1584_s1 + $0x288] sm:$0xff]  ;;  %v108_v39 = vld [vmem:[%s1584_s1 + $0x280] sm:$0xff]  ;;  %v468_v42 = vld [vmem:[%s1586_s3 + $0x190] sm:$0xff] }
  0x30   :  { %935 = vmatprep.subr.mxu0 %v117_v21  ;;  %v93_v38 = vld [vmem:[%s1584_s1 + $0x208] sm:$0xff]  ;;  %v92_v40 = vld [vmem:[%s1584_s1 + $0x200] sm:$0xff]  ;;  %v472_v44 = vld [vmem:[%s1586_s3 + $0x1b0] sm:$0xff]  ;;  %531 = vmatprep.subr.mxu1 %v468_v42 }
  0x31   :  { %936 = vmatpush3.msra.mxu0 %v101_v22  ;;  %v25_v41 = vld [vmem:[%s1583_s0 + $0x20] sm:$0xff]  ;;  %v467_v43 = vld [vmem:[%s1586_s3 + $0x188] sm:$0xff]  ;;  %v461_v45 = vld [vmem:[%s1586_s3 + $0x158] sm:$0xff] }
  0x32   :  { %937 = vmatprep.subr.mxu0 %v116_v23  ;;  %v471_v46 = vld [vmem:[%s1586_s3 + $0x1a8] sm:$0xff]  ;;  %v460_v47 = vld [vmem:[%s1586_s3 + $0x150] sm:$0xff]  ;;  %532 = vmatpush1.msra.mxu1 %v467_v43  ;;  %v465_v48 = vld [vmem:[%s1586_s3 + $0x178] sm:$0xff] }
  0x33   :  { %938 = vmatpush3.msra.mxu0 %v100_v24  ;;  %v454_v49 = vld [vmem:[%s1586_s3 + $0x120] sm:$0xff]  ;;  %v464_v50 = vld [vmem:[%s1586_s3 + $0x170] sm:$0xff]  ;;  %533 = vmatprep.subr.mxu1 %v461_v45  ;;  %v453_v51 = vld [vmem:[%s1586_s3 + $0x118] sm:$0xff] }
  0x34   :  { %939 = vmatprep.subr.mxu0 %v115_v25  ;;  %v458_v52 = vld [vmem:[%s1586_s3 + $0x140] sm:$0xff]  ;;  %534 = vmatpush1.msra.mxu1 %v460_v47  ;;  %v447_v53 = vld [vmem:[%s1586_s3 + $0xe8] sm:$0xff]  ;;  %v457_v54 = vld [vmem:[%s1586_s3 + $0x138] sm:$0xff] }
  0x35   :  { %940 = vmatpush3.msra.mxu0 %v99_v26  ;;  %535 = vmatprep.subr.mxu1 %v454_v49  ;;  %v446_v55 = vld [vmem:[%s1586_s3 + $0xe0] sm:$0xff]  ;;  %v451_v56 = vld [vmem:[%s1586_s3 + $0x108] sm:$0xff]  ;;  %v440_v57 = vld [vmem:[%s1586_s3 + $0xb0] sm:$0xff] }
  0x36   :  { %941 = vmatprep.subr.mxu0 %v114_v27  ;;  %536 = vmatpush1.msra.mxu1 %v453_v51  ;;  %v450_v58 = vld [vmem:[%s1586_s3 + $0x100] sm:$0xff]  ;;  %v439_v59 = vld [vmem:[%s1586_s3 + $0xa8] sm:$0xff]  ;;  %v444_v60 = vld [vmem:[%s1586_s3 + $0xd0] sm:$0xff] }
  0x37   :  { %942 = vmatpush3.msra.mxu0 %v98_v28  ;;  %537 = vmatprep.subr.mxu1 %v447_v53  ;;  %v433_v61 = vld [vmem:[%s1586_s3 + $0x78] sm:$0xff]  ;;  %v443_v62 = vld [vmem:[%s1586_s3 + $0xc8] sm:$0xff]  ;;  %v432_v63 = vld [vmem:[%s1586_s3 + $0x70] sm:$0xff] }
  0x38   :  { %943 = vmatprep.subr.mxu0 %v113_v29  ;;  %538 = vmatpush1.msra.mxu1 %v446_v55  ;;  %v437_v0 = vld [vmem:[%s1586_s3 + $0x98] sm:$0xff]  ;;  %v426_v1 = vld [vmem:[%s1586_s3 + $0x40] sm:$0xff]  ;;  %v436_v2 = vld [vmem:[%s1586_s3 + $0x90] sm:$0xff] }
  0x39   :  { %944 = vmatpush3.msra.mxu0 %v97_v30  ;;  %539 = vmatprep.subr.mxu1 %v440_v57  ;;  %v425_v3 = vld [vmem:[%s1586_s3 + $0x38] sm:$0xff]  ;;  %v430_v4 = vld [vmem:[%s1586_s3 + $0x60] sm:$0xff]  ;;  %v419_v5 = vld [vmem:[%s1586_s3 + $0x8] sm:$0xff] }
  0x3a   :  { %945 = vmatprep.subr.mxu0 %v112_v31  ;;  %540 = vmatpush1.msra.mxu1 %v439_v59  ;;  %v429_v6 = vld [vmem:[%s1586_s3 + $0x58] sm:$0xff]  ;;  %v418_v7 = vld [vmem:[%s1586_s3] sm:$0xff]  ;;  %v423_v8 = vld [vmem:[%s1586_s3 + $0x28] sm:$0xff] }
  0x3b   :  { %946 = vmatpush3.msra.mxu0 %v96_v32  ;;  %541 = vmatprep.subr.mxu1 %v433_v61  ;;  %v470_v9 = vld [vmem:[%s1586_s3 + $0x1a0] sm:$0xff]  ;;  %v469_v29 = vld [vmem:[%s1586_s3 + $0x198] sm:$0xff]  ;;  %v463_v30 = vld [vmem:[%s1586_s3 + $0x168] sm:$0xff] }
  0x3c   :  { %947 = vmatprep.subr.mxu0 %v111_v33  ;;  %542 = vmatpush1.msra.mxu1 %v432_v63  ;;  %v422_v10 = vld [vmem:[%s1586_s3 + $0x20] sm:$0xff]  ;;  %v456_v32 = vld [vmem:[%s1586_s3 + $0x130] sm:$0xff]  ;;  %v455_v33 = vld [vmem:[%s1586_s3 + $0x128] sm:$0xff] }
  0x3d   :  { %948 = vmatpush3.msra.mxu0 %v95_v34  ;;  %543 = vmatprep.subr.mxu1 %v426_v1  ;;  %v847_v19 = vld [vmem:[%s1585_s2] ss:$0 sm:$0xff]  ;;  %v449_v34 = vld [vmem:[%s1586_s3 + $0xf8] sm:$0xff]  ;;  %v420_v43 = vld [vmem:[%s1586_s3 + $0x10] sm:$0xff] }
  0x3e   :  { %949 = vmatprep.subr.mxu0 %v110_v35  ;;  %544 = vmatpush1.msra.mxu1 %v425_v3  ;;  %v462_v31 = vld [vmem:[%s1586_s3 + $0x160] sm:$0xff]  ;;  %v448_v35 = vld [vmem:[%s1586_s3 + $0xf0] sm:$0xff]  ;;  %v421_v42 = vld [vmem:[%s1586_s3 + $0x18] sm:$0xff] }
  0x3f   :  { %950 = vmatpush3.msra.mxu0 %v94_v36  ;;  %545 = vmatprep.subr.mxu1 %v419_v5  ;;  %v442_v36 = vld [vmem:[%s1586_s3 + $0xc0] sm:$0xff]  ;;  %v452_v47 = vld [vmem:[%s1586_s3 + $0x110] sm:$0xff] }
  0x40   :  { %951 = vmatprep.subr.mxu0 %v109_v37  ;;  %546 = vmatpush1.msra.mxu1 %v418_v7  ;;  %v441_v37 = vld [vmem:[%s1586_s3 + $0xb8] sm:$0xff]  ;;  %v466_v45 = vld [vmem:[%s1586_s3 + $0x180] sm:$0xff]  ;;  %v424_v51 = vld [vmem:[%s1586_s3 + $0x30] sm:$0xff] }
  0x41   :  { %952 = vmatpush3.msra.mxu0 %v93_v38  ;;  %602 = vmatprep.subr.mxu1 %v470_v9  ;;  %v435_v38 = vld [vmem:[%s1586_s3 + $0x88] sm:$0xff]  ;;  %v438_v49 = vld [vmem:[%s1586_s3 + $0xa0] sm:$0xff] }
  0x42   :  { %953 = vmatprep.subr.mxu0 %v108_v39  ;;  %v434_v39 = vld [vmem:[%s1586_s3 + $0x80] sm:$0xff] }
  0x43   :  { %954 = vmatpush3.msra.mxu0 %v92_v40  ;;  %v428_v40 = vld [vmem:[%s1586_s3 + $0x50] sm:$0xff] }
  0x44   :  { %342 = vmatmul.mubr.f32.vlgmr.msra.gmra.mxu0 %v25_v41  ;;  %673 = vmatprep.subr.mxu0 %v472_v44  ;;  %v427_v41 = vld [vmem:[%s1586_s3 + $0x48] sm:$0xff]  ;;  %v473_v44 = vld [vmem:[%s1586_s3 + $0x1b8] sm:$0xff] }
  0x45   :  { %721 = vmatprep.mubr.f32.mxu0 %v1035_v14  ;;  %674 = vmatpush1.msra.mxu0 %v471_v46  ;;  %v459_v46 = vld [vmem:[%s1586_s3 + $0x148] sm:$0xff] }
  0x46   :  { %675 = vmatprep.subr.mxu0 %v465_v48  ;;  %v445_v48 = vld [vmem:[%s1586_s3 + $0xd8] sm:$0xff] }
  0x47   :  { %676 = vmatpush1.msra.mxu0 %v464_v50  ;;  %v431_v50 = vld [vmem:[%s1586_s3 + $0x68] sm:$0xff]  ;;  %s1037_s3 = smov [#allocation2]  }
  0x48   :  { %677 = vmatprep.subr.mxu0 %v458_v52  ;;  %v476_v52 = vlaneseq }
  0x49   :  { %678 = vmatpush1.msra.mxu0 %v457_v54 }
  0x4a   :  { %679 = vmatprep.subr.mxu0 %v451_v56  ;;  %v477_v53 = vshrl.u32 %v476_v52, 7  ;;  %v474_v56 = vld [vmem:[%s1587_s4] sm:$0x7f]  ;;  %s839_s4 = sshll.u32 %s1037_s3, 4  ;;  %s840_s4 = int_to_ptr.vmem [resolvable:$true] %s839_s4 }
  0x4b   :  { %680 = vmatpush1.msra.mxu0 %v450_v58  ;;  %s1013_s0 = scalar_lea.vmem %s840_s4, 896  ;;  %p1018_p1 = scmp.lt.s32.totalorder %s840_s4, %s840_s4 }
  0x4c   :  { %681 = vmatprep.subr.mxu0 %v444_v60  ;;  %v478_v54 = vsub.s32 0, %v477_v53  ;;  %v494_v55 = vsub.s32 4, %v477_v53  ;;  %v482_v57 = vsub.s32 1, %v477_v53  ;;  %v498_v58 = vsub.s32 5, %v477_v53  ;;  %p1014_p0 = scmp.ne.s32.totalorder %s840_s4, %s1013_s0  ;;  %p1019_p2 = scmp.lt.s32.totalorder %s1013_s0, %s1013_s0 }
  0x4d   :  { %682 = vmatpush1.msra.mxu0 %v443_v62 }
  0x4e   :  { %683 = vmatprep.subr.mxu0 %v437_v0  ;;  %v479_v59 = vrot.slane %v474_v56, %v478_v54  ;;  %v495_v60 = vrot.slane %v474_v56, %v494_v55  ;;  %v483_v61 = vrot.slane %v474_v56, %v482_v57  ;;  %v499_v62 = vrot.slane %v474_v56, %v498_v58  ;;  %p1020_p3 = por %p1019_p2, %p1018_p1 }
  0x4f   :  { %684 = vmatpush1.msra.mxu0 %v436_v2 }
  0x50   :  { %685 = vmatprep.subr.mxu0 %v430_v4  ;;  %p1021_p4 = pnand %p1020_p3, %p1014_p0 }
  0x51   :  { %686 = vmatpush1.msra.mxu0 %v429_v6 }
  0x52   :  { %687 = vmatprep.subr.mxu0 %v423_v8 }
  0x53   :  { %688 = vmatpush1.msra.mxu0 %v422_v10  ;;  %v486_v10 = vsub.s32 2, %v477_v53 }
  0xe2   :  { %v885_v16 = vpop.f32.mrf.mxu0 }
  0xe4   :  { %v886_v17 = vpop.f32.mrf.mxu0 }
  0xe5   :  { %v887_v18 = vadd.f32 %v886_v17, %v885_v16 }
  0xe6   :  { %v920_v11 = vpop.f32.mrf.mxu1 }
  0xe7   :  { %v204_v20 = vadd.f32 %v887_v18, %v847_v19 }
  0xe8   :  { %v921_v12 = vpop.f32.mrf.mxu1 }
  0xe9   :  { %v922_v21 = vadd.f32 %v921_v12, %v920_v11  ;;  %v490_v11 = vsub.s32 3, %v477_v53  ;;  %v487_v12 = vrot.slane %v474_v56, %v486_v10 }
  0xeb   :  { %v274_v24 = vadd.f32 %v922_v21, %v204_v20 }
  0xed   :  { %v413_v13 = vpop.f32.mrf.mxu1 }
  0xef   :  { %v976_v15 = vpop.f32.mrf.mxu1 }
 0x104   :  { %v955_v22 = vpop.f32.mrf.mxu0 }
 0x106   :  { %v956_v23 = vpop.f32.mrf.mxu0 }
 0x107   :  { %v957_v25 = vadd.f32 %v956_v23, %v955_v22 }
 0x109   :  { %v344_v26 = vadd.f32 %v957_v25, %v274_v24 }
 0x10b   :  { %v414_v27 = vadd.f32 %v413_v13, %v344_v26  ;;  %v491_v13 = vrot.slane %v474_v56, %v490_v11 }
 0x10d   :  { %v417_v28 = vmax.f32 %v414_v27, 0.0 }
 0x10f   :  { %849 = vmatmul.mubr.msk.f32.vlgmr.msra.gmra.mxu1 %vm511_vm2, %v417_v28  ;;  %851 = vmatmul.mubr.msk.f32.vlgmr.msra.gmra.mxu0 %vm511_vm2, %v417_v28 }
 0x110   :  { %603 = vmatpush1.msra.mxu1 %v469_v29  ;;  %650 = vmatprep.mubr.f32.mxu1 %v1035_v14 }
 0x111   :  { %604 = vmatprep.subr.mxu1 %v463_v30 }
 0x112   :  { %605 = vmatpush1.msra.mxu1 %v462_v31 }
 0x113   :  { %606 = vmatprep.subr.mxu1 %v456_v32 }
 0x114   :  { %607 = vmatpush1.msra.mxu1 %v455_v33  ;;  %v502_v33 = vsub.s32 6, %v477_v53 }
 0x115   :  { %608 = vmatprep.subr.mxu1 %v449_v34 }
 0x116   :  { %609 = vmatpush1.msra.mxu1 %v448_v35  ;;  %v503_v34 = vrot.slane %v474_v56, %v502_v33 }
 0x117   :  { %610 = vmatprep.subr.mxu1 %v442_v36 }
 0x118   :  { %611 = vmatpush1.msra.mxu1 %v441_v37 }
 0x119   :  { %612 = vmatprep.subr.mxu1 %v435_v38 }
 0x11a   :  { %613 = vmatpush1.msra.mxu1 %v434_v39 }
 0x11b   :  { %614 = vmatprep.subr.mxu1 %v428_v40 }
 0x11c   :  { %615 = vmatpush1.msra.mxu1 %v427_v41 }
 0x11d   :  { %616 = vmatprep.subr.mxu1 %v421_v42 }
 0x11e   :  { %617 = vmatpush1.msra.mxu1 %v420_v43 }
 0x11f   :  { %850 = vmatmul.mubr.msk.f32.vlgmr.msra.gmra.mxu1 %vm511_vm2, %v417_v28  ;;  %977 = vmatprep.subr.mxu1 %v1035_v14 }
 0x120   :  { %978 = vmatpush3.msra.mxu1 %v473_v44  ;;  %993 = vmatprep.mubr.msk.f32.mxu1 %vm1036_vm1, %v1035_v14 }
 0x121   :  { %979 = vmatprep.subr.mxu1 %v1035_v14 }
 0x122   :  { %980 = vmatpush3.msra.mxu1 %v466_v45 }
 0x123   :  { %981 = vmatprep.subr.mxu1 %v1035_v14 }
 0x124   :  { %982 = vmatpush3.msra.mxu1 %v459_v46 }
 0x125   :  { %983 = vmatprep.subr.mxu1 %v1035_v14 }
 0x126   :  { %984 = vmatpush3.msra.mxu1 %v452_v47 }
 0x127   :  { %985 = vmatprep.subr.mxu1 %v1035_v14 }
 0x128   :  { %986 = vmatpush3.msra.mxu1 %v445_v48 }
 0x129   :  { %987 = vmatprep.subr.mxu1 %v1035_v14 }
 0x12a   :  { %988 = vmatpush3.msra.mxu1 %v438_v49 }
 0x12b   :  { %989 = vmatprep.subr.mxu1 %v1035_v14 }
 0x12c   :  { %990 = vmatpush3.msra.mxu1 %v431_v50 }
 0x12d   :  { %991 = vmatprep.subr.mxu1 %v1035_v14 }
 0x12e   :  { %992 = vmatpush3.msra.mxu1 %v424_v51 }
 0x12f   :  { %994 = vmatmul.mubr.msk.f32.vlgmr.msra.gmra.mxu1 %vm511_vm2, %v417_v28 }
 0x1cf   :  { %v581_v63 = vpop.f32.mrf.mxu1  ;;  %v723_v0 = vpop.f32.mrf.mxu0 }
 0x1d0   :  { %v582_v14 = vadd.f32 %v581_v63, %v479_v59  ;;  %v724_v1 = vadd.f32 %v723_v0, %v495_v60 }
 0x1d1   :  { %v583_v2 = vpop.f32.mrf.mxu1  ;;  %v725_v3 = vpop.f32.mrf.mxu0 }
 0x1d2   :  { %v798_v4 = vmul.f32 0.5, %v582_v14  ;;  %v802_v5 = vmul.f32 0.5, %v724_v1  ;;  %v584_v6 = vadd.f32 %v583_v2, %v483_v61  ;;  %v726_v7 = vadd.f32 %v725_v3, %v499_v62 }
 0x1d4   :  { %999 = vtanh.f32 %v798_v4  ;;  %v799_v8 = vmul.f32 0.5, %v584_v6  ;;  %v803_v9 = vmul.f32 0.5, %v726_v7 }
 0x1d5   :  { %1001 = vtanh.f32 %v802_v5 }
 0x1d6   :  { %1003 = vtanh.f32 %v799_v8 }
 0x1d7   :  { %1005 = vtanh.f32 %v803_v9 }
 0x1df   :  { %v652_v15 = vpop.f32.mrf.mxu1 }
 0x1e0   :  { %v653_v16 = vadd.f32 %v652_v15, %v487_v12 }
 0x1e1   :  { %v1000_v17 = vpop.eup %999  ;;  %v654_v18 = vpop.f32.mrf.mxu1 }
 0x1e2   :  { %v1002_v19 = vpop.eup %1001  ;;  %v812_v20 = vadd.f32 1.0, %v1000_v17  ;;  %v800_v21 = vmul.f32 0.5, %v653_v16  ;;  %v655_v22 = vadd.f32 %v654_v18, %v491_v13 }
 0x1e3   :  { %v1004_v23 = vpop.eup %1003  ;;  %v816_v24 = vadd.f32 1.0, %v1002_v19 }
 0x1e4   :  { %v1006_v25 = vpop.eup %1005  ;;  %v819_v26 = vmul.f32 0.5, %v812_v20  ;;  %v813_v27 = vadd.f32 1.0, %v1004_v23  ;;  %1007 = vtanh.f32 %v800_v21  ;;  %v801_v28 = vmul.f32 0.5, %v655_v22 }
 0x1e5   :  { %v823_v29 = vmul.f32 0.5, %v816_v24  ;;  %v817_v30 = vadd.f32 1.0, %v1006_v25 }
 0x1e6   :  { %826 = vst [vmem:[#allocation2] sm:$0xff] %v819_v26  ;;  %v820_v31 = vmul.f32 0.5, %v813_v27  ;;  %1009 = vtanh.f32 %v801_v28 }
 0x1e7   :  { %830 = vst [vmem:[#allocation2 + $0x20] sm:$0xff] %v823_v29  ;;  %v824_v32 = vmul.f32 0.5, %v817_v30 }
 0x1e8   :  { %827 = vst [vmem:[#allocation2 + $0x8] sm:$0xff] %v820_v31 }
 0x1e9   :  { %831 = vst [vmem:[#allocation2 + $0x28] sm:$0xff] %v824_v32 }
 0x1ef   :  { %v794_v35 = vpop.f32.mrf.mxu1 }
 0x1f0   :  { %v795_v36 = vadd.f32 %v794_v35, %v503_v34 }
 0x1f1   :  { %v1008_v37 = vpop.eup %1007  ;;  %v995_v38 = vpop.f32.mrf.mxu1 }
 0x1f2   :  { %v814_v39 = vadd.f32 1.0, %v1008_v37  ;;  %v804_v40 = vmul.f32 0.5, %v795_v36 }
 0x1f3   :  { %v1010_v41 = vpop.eup %1009 }
 0x1f4   :  { %v821_v42 = vmul.f32 0.5, %v814_v39  ;;  %v815_v43 = vadd.f32 1.0, %v1010_v41  ;;  %1011 = vtanh.f32 %v804_v40 }
 0x1f6   :  { %828 = vst [vmem:[#allocation2 + $0x10] sm:$0xff] %v821_v42  ;;  %v822_v44 = vmul.f32 0.5, %v815_v43 }
 0x1f8   :  { %829 = vst [vmem:[#allocation2 + $0x18] sm:$0xff] %v822_v44 }
 0x201   :  { %v1012_v45 = vpop.eup %1011 }
 0x202   :  { %v818_v46 = vadd.f32 1.0, %v1012_v45 }
 0x204   :  { %v825_v47 = vmul.f32 0.5, %v818_v46 }
 0x206   :  { %832 = vst.msk [vmem:[#allocation2 + $0x30] sm:$0xff] %vm133_vm0, %v825_v47 }
 0x207   :  { %1024 = shalt.err (!%p1021_p4)
}
 0x208   :  { %842 = dma.vmem_to_hbm [thread:$0]  %s840_s4, 896, %s1588_s5, [#allocation3]  }
 0x209   :  { %1033 = dma.done.wait [#allocation3], 896  }
 0x20a   :  { %1034 = vsyncadd [#allocation3], 4294966400 }
 0x20b   :  { %846 = vsyncpa [#allocation3], 1 }

</bundles_post_ra>
